<compile_context>
chip_gen: v7x
topology: tpu7x:2x2x1
jax: 0.10.0
libtpu: 0.0.40
codegen_flags: <defaults>
</compile_context>

<pallas_src>
import functools

import jax
import jax.numpy as jnp
from jax.experimental import pallas as pl
from jax.experimental.pallas import tpu as pltpu


def _round_up(x, m):
    return (x + m - 1) // m * m


def _device_kind():
    try:
        return jax.devices()[0].device_kind.lower()
    except Exception:
        return ""


_KIND = _device_kind()
_IS_V5 = "v5" in _KIND
# v7x has only 64 MiB physical VMEM per core; v5e/v6e have 128 MiB.
_VMEM_LIMIT = (48 if ("7" in _KIND or not _KIND) else 96) * 1024 * 1024
_TM_CAP = 512 if _VMEM_LIMIT < 64 * 1024 * 1024 else 1024

_CP_1D = pltpu.CompilerParams(dimension_semantics=("parallel",),
                              vmem_limit_bytes=_VMEM_LIMIT)
_CP_2D = pltpu.CompilerParams(dimension_semantics=("parallel", "parallel"),
                              vmem_limit_bytes=_VMEM_LIMIT)


# ----------------------------------------------------------------------------
# Pallas kernels
# ----------------------------------------------------------------------------
def _mm_bias_kernel(relu, a_ref, w_ref, b_ref, o_ref):
    acc = jnp.dot(a_ref[...], w_ref[...], preferred_element_type=jnp.float32)
    acc = acc + b_ref[...]
    if relu:
        acc = jnp.maximum(acc, 0.0)
    o_ref[...] = acc.astype(o_ref.dtype)


def _conv3x3s1_kernel(offsets, lout, chunk, res_shift, relu, *refs):
    # 3x3 / stride-1 conv as 9 shifted-slice matmuls over the flattened,
    # spatially padded image (kept whole in VMEM), f32 accumulation,
    # fused bias (+ residual) (+ relu) epilogue.
    if res_shift is None:
        x_ref, w_ref, b_ref, o_ref = refs
        r_ref = None
    else:
        x_ref, w_ref, b_ref, r_ref, o_ref = refs
    for q0 in range(0, lout, chunk):
        rows = min(chunk, lout - q0)
        acc = None
        for t, off in enumerate(offsets):
            a = x_ref[0, q0 + off:q0 + off + rows, :]
            d = jnp.dot(a, w_ref[t], preferred_element_type=jnp.float32)
            acc = d if acc is None else acc + d
        acc = acc + b_ref[...]
        if r_ref is not None:
            acc = acc + r_ref[0, q0 + res_shift:q0 + res_shift + rows,
                              :].astype(jnp.float32)
        if relu:
            acc = jnp.maximum(acc, 0.0)
        o_ref[0, q0:q0 + rows, :] = acc.astype(o_ref.dtype)


def _maxpool_kernel(ho, wo, p00, p01, p10, p11, o_ref):
    # 3x3/s2 max-pool over the 2x2 phase decomposition of the padded image:
    # every tap is a unit-shift static slice, max taken fully in VMEM.
    def tap(ref, dh, dw):
        return ref[0, dh:dh + ho, dw:dw + wo, :]

    m = tap(p00, 0, 0)
    for ref, dh, dw in ((p01, 0, 0), (p00, 0, 1), (p10, 0, 0), (p11, 0, 0),
                        (p10, 0, 1), (p00, 1, 0), (p01, 1, 0), (p00, 1, 1)):
        m = jnp.maximum(m, tap(ref, dh, dw))
    o_ref[0] = m


def _mean_kernel(x_ref, o_ref):
    o_ref[...] = jnp.mean(x_ref[...].astype(jnp.float32), axis=1)


# ----------------------------------------------------------------------------
# Pallas wrappers
# ----------------------------------------------------------------------------
def _pick_tm(m, cap):
    if m <= cap:
        return m
    for t in range(cap, 7, -8):
        if m % t == 0:
            return t
    return cap


def fused_matmul_bias(a, w, bias, relu=True):
    """out = act(a @ w + bias); a (M,K) bf16, w (K,Cout) bf16, bias (1,Cout) f32."""
    m, k = a.shape
    cout = w.shape[1]
    tn = 256 if (cout >= 256 and not _IS_V5) else min(cout, 128)
    tm = _pick_tm(m, _TM_CAP)
    m_pad = _round_up(m, tm)
    a_p = a if m_pad == m else jnp.pad(a, ((0, m_pad - m), (0, 0)))
    out = pl.pallas_call(
        functools.partial(_mm_bias_kernel, relu),
        out_shape=jax.ShapeDtypeStruct((m_pad, cout), jnp.bfloat16),
        grid=(m_pad // tm, cout // tn),
        in_specs=[pl.BlockSpec((tm, k), lambda i, j: (i, 0)),
                  pl.BlockSpec((k, tn), lambda i, j: (0, j)),
                  pl.BlockSpec((1, tn), lambda i, j: (0, j))],
        out_specs=pl.BlockSpec((tm, tn), lambda i, j: (i, j)),
        compiler_params=_CP_2D,
    )(a_p, w, bias)
    return out if m_pad == m else out[:m]


def conv_im2col(x, layer, stride, padding, relu=True):
    """im2col + matmul path; only used for the stride-2 convolutions."""
    n, h, w, cin = x.shape
    w9, bias, ks = layer["w"], layer["b"], layer["k"]
    cout = w9.shape[-1]
    ho = (h + 2 * padding - ks) // stride + 1
    wo = (w + 2 * padding - ks) // stride + 1
    xp = x if padding == 0 else jnp.pad(
        x, ((0, 0), (padding, padding), (padding, padding), (0, 0)))
    cols = [
        xp[:, kh:kh + stride * ho:stride, kw:kw + stride * wo:stride, :]
        for kh in range(ks) for kw in range(ks)
    ]
    a = cols[0] if len(cols) == 1 else jnp.concatenate(cols, axis=-1)
    a = a.reshape(n * ho * wo, ks * ks * cin)
    wm = w9.reshape(ks * ks * cin, cout)
    out = fused_matmul_bias(a, wm, bias, relu=relu)
    return out.reshape(n, ho, wo, cout)


def _pad_flat_s1(x):
    """Pad H by (1,2) and W by (1,1), flatten spatial dims.

    In the flattened padded layout every 3x3 tap is a pure shift kh*Wp+kw; the
    extra bottom row only absorbs the over-read of the (discarded) padded-width
    output positions."""
    n, h, w, c = x.shape
    wp = w + 2
    xp = jnp.pad(x, ((0, 0), (1, 2), (1, 1), (0, 0)))
    return xp.reshape(n, (h + 3) * wp, c), wp


def conv3x3_s1(x, layer, relu=True, residual=None, x_flat=None, wp=None):
    """3x3 / stride-1 / pad-1 conv + folded BN (+ residual) (+ ReLU), NHWC bf16.

    residual: optional (flat_array (N, Lr, Cout), flat_shift) read inside the
    kernel and added before the ReLU.  Outputs are produced in padded-width
    layout (Wp = W + 2); the two garbage columns per row are sliced off here.
    """
    n, h, w, cin = x.shape
    w9, bias = layer["w"], layer["b"]
    cout = w9.shape[-1]
    if x_flat is None:
        x_flat, wp = _pad_flat_s1(x)
    lin = x_flat.shape[1]
    lout = h * wp
    offsets = tuple(kh * wp + kw for kh in range(3) for kw in range(3))

    tn = 256 if (cout >= 256 and not _IS_V5) else min(cout, 128)
    nj = cout // tn
    row_cost = 4 * tn + 2 * cin            # f32 accumulator + one bf16 tap slice
    chunk = min(lout, max(64, (2 * 1024 * 1024) // row_cost))

    if residual is not None:
        r_flat, res_shift = residual
        lr = r_flat.shape[1]
    else:
        r_flat = res_shift = lr = None

    # Grid order keeps the larger of {padded image, weights} VMEM-resident.
    w_bytes = 9 * cin * cout * 2
    x_bytes = lin * cin * 2
    if w_bytes > x_bytes:
        grid = (nj, n)
        x_spec = pl.BlockSpec((1, lin, cin), lambda j, b: (b, 0, 0))
        w_spec = pl.BlockSpec((9, cin, tn), lambda j, b: (0, 0, j))
        b_spec = pl.BlockSpec((1, tn), lambda j, b: (0, j))
        o_spec = pl.BlockSpec((1, lout, tn), lambda j, b: (b, 0, j))
        r_spec = (None if r_flat is None else
                  pl.BlockSpec((1, lr, tn), lambda j, b: (b, 0, j)))
    else:
        grid = (n, nj)
        x_spec = pl.BlockSpec((1, lin, cin), lambda b, j: (b, 0, 0))
        w_spec = pl.BlockSpec((9, cin, tn), lambda b, j: (0, 0, j))
        b_spec = pl.BlockSpec((1, tn), lambda b, j: (0, j))
        o_spec = pl.BlockSpec((1, lout, tn), lambda b, j: (b, 0, j))
        r_spec = (None if r_flat is None else
                  pl.BlockSpec((1, lr, tn), lambda b, j: (b, 0, j)))

    in_specs = [x_spec, w_spec, b_spec]
    args = [x_flat, w9, bias]
    if r_flat is not None:
        in_specs.append(r_spec)
        args.append(r_flat)

    out_flat = pl.pallas_call(
        functools.partial(_conv3x3s1_kernel, offsets, lout, chunk, res_shift,
                          relu),
        out_shape=jax.ShapeDtypeStruct((n, lout, cout), jnp.bfloat16),
        grid=grid,
        in_specs=in_specs,
        out_specs=o_spec,
        compiler_params=_CP_2D,
    )(*args)
    return out_flat.reshape(n, h, wp, cout)[:, :, :w, :]


def maxpool_3x3_s2(x):
    """PyTorch MaxPool2d(kernel_size=3, stride=2, padding=1), NHWC bf16."""
    n, h, w, c = x.shape
    ho = (h + 2 - 3) // 2 + 1
    wo = (w + 2 - 3) // 2 + 1
    xp = jnp.pad(x, ((0, 0), (1, 1), (1, 1), (0, 0)),
                 constant_values=-jnp.inf)
    # 2x2 phase decomposition (~1x the input bytes) so the kernel only needs
    # unit-shift static slices; all 9 taps are reduced in VMEM.
    p00 = xp[:, 0::2, 0::2, :][:, :ho + 1, :wo + 1, :]
    p01 = xp[:, 0::2, 1::2, :][:, :ho + 1, :wo, :]
    p10 = xp[:, 1::2, 0::2, :][:, :ho, :wo + 1, :]
    p11 = xp[:, 1::2, 1::2, :][:, :ho, :wo, :]
    shapes = [p.shape for p in (p00, p01, p10, p11)]
    return pl.pallas_call(
        functools.partial(_maxpool_kernel, ho, wo),
        out_shape=jax.ShapeDtypeStruct((n, ho, wo, c), x.dtype),
        grid=(n,),
        in_specs=[pl.BlockSpec((1,) + s[1:], lambda b: (b, 0, 0, 0))
                  for s in shapes],
        out_specs=pl.BlockSpec((1, ho, wo, c), lambda b: (b, 0, 0, 0)),
        compiler_params=_CP_1D,
    )(p00, p01, p10, p11)


def spatial_mean(x):
    """Mean over H and W. x: NHWC bf16 -> (N, C) float32 (single kernel call)."""
    n, h, w, c = x.shape
    xr = x.reshape(n, h * w, c)
    return pl.pallas_call(
        _mean_kernel,
        out_shape=jax.ShapeDtypeStruct((n, c), jnp.float32),
    )(xr)


# ----------------------------------------------------------------------------
# Parameter initialization (deterministic, synthetic) + kernel-ready prep
# ----------------------------------------------------------------------------
def _bn_fold(key, c, eps=1e-5):
    k1, k2, k3, k4 = jax.random.split(key, 4)
    gamma = 1.0 + 0.1 * jax.random.normal(k1, (c,), jnp.float32)
    beta = 0.1 * jax.random.normal(k2, (c,), jnp.float32)
    mean = 0.1 * jax.random.normal(k3, (c,), jnp.float32)
    var = jax.random.uniform(k4, (c,), jnp.float32, minval=0.5, maxval=1.5)
    scale = gamma / jnp.sqrt(var + eps)
    bias = beta - mean * scale
    return scale, bias


def _prep_conv(w_key, bn_key, cout, cin, k):
    """Conv + folded (inference) BN -> (k*k, cin, cout) bf16 weights + f32 bias."""
    w = 0.05 * jax.random.normal(w_key, (cout, cin, k, k), jnp.float32)
    scale, bias = _bn_fold(bn_key, cout)
    w9 = jnp.transpose(w, (2, 3, 1, 0)).reshape(k * k, cin, cout) * scale
    return {"w": w9.astype(jnp.bfloat16),
            "b": bias.reshape(1, cout).astype(jnp.float32),
            "k": k}


def init_params(key):
    # TODO(synk): real torchvision pretrained weights cannot be loaded here;
    # deterministic synthetic weights stand in for them.
    keys = iter(jax.random.split(key, 128))
    nk = lambda: next(keys)

    params = {"conv1": _prep_conv(nk(), nk(), 64, 3, 7)}

    def make_block(cin, cout, stride):
        blk = {
            "stride": stride,
            "conv1": _prep_conv(nk(), nk(), cout, cin, 3),
            "conv2": _prep_conv(nk(), nk(), cout, cout, 3),
        }
        if stride != 1 or cin != cout:
            blk["down"] = _prep_conv(nk(), nk(), cout, cin, 1)
        return blk

    params["layer1"] = [make_block(64, 64, 1), make_block(64, 64, 1)]
    params["layer2"] = [make_block(64, 128, 2), make_block(128, 128, 1)]
    params["layer3"] = [make_block(128, 256, 2), make_block(256, 256, 1)]
    params["layer4"] = [make_block(256, 512, 2), make_block(512, 512, 1)]
    return params


# ----------------------------------------------------------------------------
# Forward pass (torchvision ResNet-18 BasicBlock semantics, inference BN)
# ----------------------------------------------------------------------------
def basic_block(x, p):
    if "down" not in p:
        x_flat, wp = _pad_flat_s1(x)
        y = conv3x3_s1(x, p["conv1"], relu=True, x_flat=x_flat, wp=wp)
        # relu(bn2(conv2(y)) + x): the identity is read straight out of the
        # already-padded block input (flat shift wp+1), fused into the kernel.
        return conv3x3_s1(y, p["conv2"], relu=True, residual=(x_flat, wp + 1))

    stride = p["stride"]
    y = conv_im2col(x, p["conv1"], stride=stride, padding=1, relu=True)
    idn = conv_im2col(x, p["down"], stride=stride, padding=0, relu=False)
    nb, ho, wo, co = idn.shape
    idn_flat = jnp.pad(idn, ((0, 0), (0, 0), (0, 2), (0, 0))).reshape(
        nb, ho * (wo + 2), co)
    return conv3x3_s1(y, p["conv2"], relu=True, residual=(idn_flat, 0))


def resnet18_forward(x_nchw, params):
    x = jnp.transpose(x_nchw, (0, 2, 3, 1)).astype(jnp.bfloat16)  # -> NHWC bf16
    x = conv_im2col(x, params["conv1"], stride=2, padding=3, relu=True)
    x = maxpool_3x3_s2(x)

    for blk in params["layer1"]:
        x = basic_block(x, blk)
    for blk in params["layer2"]:
        x = basic_block(x, blk)
    for blk in params["layer3"]:
        x = basic_block(x, blk)
    feature3 = x
    for blk in params["layer4"]:
        x = basic_block(x, blk)
    feature4 = x

    tail = spatial_mean(feature4)                                 # (N, C) f32

    # Back to PyTorch NCHW convention (f32 public dtype).
    feature3_nchw = jnp.transpose(feature3, (0, 3, 1, 2)).astype(jnp.float32)
    feature4_nchw = jnp.transpose(feature4, (0, 3, 1, 2)).astype(jnp.float32)
    tail_nchw = tail.reshape(tail.shape[0], tail.shape[1], 1, 1)
    return feature3_nchw, feature4_nchw, tail_nchw


if __name__ == "__main__":
    key = jax.random.PRNGKey(0)
    kx, kp = jax.random.split(key)
    # ResNet-18 needs 3 input channels; 64x64 spatial keeps every stage nonempty.
    x = jax.random.normal(kx, (2, 3, 64, 64), jnp.float32)
    params = init_params(kp)

    f3, f4, tail = resnet18_forward(x, params)
    jax.block_until_ready((f3, f4, tail))

    assert f3.shape == (2, 256, 4, 4), f3.shape
    assert f4.shape == (2, 512, 2, 2), f4.shape
    assert tail.shape == (2, 512, 1, 1), tail.shape
    assert jnp.isfinite(f3).all() and jnp.isfinite(f4).all()
    assert jnp.isfinite(tail).all()

    print("KERNEL_OK")
</pallas_src>

<mosaic_0001>
module attributes {stable_mosaic.version = 11 : i64} {
  func.func @_mm_bias_kernel(%arg0: i32, %arg1: i32, %arg2: memref<1024x147xbf16, #tpu.memory_space<vmem>>, %arg3: memref<147x64xbf16, #tpu.memory_space<vmem>>, %arg4: memref<1x64xf32, #tpu.memory_space<vmem>>, %arg5: memref<1024x64xbf16, #tpu.memory_space<vmem>>) attributes {dimension_semantics = [#tpu.dimension_semantics<parallel>, #tpu.dimension_semantics<parallel>], iteration_bounds = array<i64: 2, 1>, scalar_prefetch = 0 : i64, scratch_operands = 0 : i64, tpu.core_type = #tpu.core_type<tc>, window_params = [{transform_indices = @transform_0, window_bounds = array<i64: 1024, 147>}, {transform_indices = @transform_1, window_bounds = array<i64: 147, 64>}, {transform_indices = @transform_2, window_bounds = array<i64: 1, 64>}, {transform_indices = @transform_3, window_bounds = array<i64: 1024, 64>}]} {
    %c0 = arith.constant 0 : index
    %c0_0 = arith.constant 0 : index
    %0 = vector.load %arg2[%c0, %c0_0] : memref<1024x147xbf16, #tpu.memory_space<vmem>>, vector<1024x147xbf16>
    %c0_1 = arith.constant 0 : index
    %c0_2 = arith.constant 0 : index
    %1 = vector.load %arg3[%c0_1, %c0_2] : memref<147x64xbf16, #tpu.memory_space<vmem>>, vector<147x64xbf16>
    %cst = arith.constant dense<0.000000e+00> : vector<1024x64xf32>
    %2 = tpu.matmul %0, %1, %cst {dimension_numbers = #tpu.dot_dimension_numbers<[1], [0], [0], [1], [0, 0, 1, 1], [], []>} : vector<1024x147xbf16>, vector<147x64xbf16>, vector<1024x64xf32> -> vector<1024x64xf32>
    %c0_3 = arith.constant 0 : index
    %c0_4 = arith.constant 0 : index
    %3 = vector.load %arg4[%c0_3, %c0_4] : memref<1x64xf32, #tpu.memory_space<vmem>>, vector<1x64xf32>
    %4 = vector.broadcast %3 : vector<1x64xf32> to vector<1024x64xf32>
    %5 = arith.addf %2, %4 : vector<1024x64xf32>
    %cst_5 = arith.constant 0.000000e+00 : f32
    %6 = vector.broadcast %cst_5 : f32 to vector<1024x64xf32>
    %7 = arith.maximumf %5, %6 : vector<1024x64xf32>
    %8 = arith.truncf %7 : vector<1024x64xf32> to vector<1024x64xbf16>
    %c0_6 = arith.constant 0 : index
    %c0_7 = arith.constant 0 : index
    %9 = vector.load %arg5[%c0_6, %c0_7] : memref<1024x64xbf16, #tpu.memory_space<vmem>>, vector<1024x64xbf16>
    tpu.vector_store %arg5[%c0_6, %c0_7], %8 {strides = array<i32>} : memref<1024x64xbf16, #tpu.memory_space<vmem>>, vector<1024x64xbf16>,
    return
  }
  func.func @transform_0(%arg0: i32, %arg1: i32) -> (i32, i32) {
    %c0_i32 = arith.constant 0 : i32
    %c0_i32_0 = arith.constant 0 : i32
    return %arg0, %c0_i32 : i32, i32
  }
  func.func @transform_1(%arg0: i32, %arg1: i32) -> (i32, i32) {
    %c0_i32 = arith.constant 0 : i32
    %c0_i32_0 = arith.constant 0 : i32
    return %c0_i32, %arg1 : i32, i32
  }
  func.func @transform_2(%arg0: i32, %arg1: i32) -> (i32, i32) {
    %c0_i32 = arith.constant 0 : i32
    %c0_i32_0 = arith.constant 0 : i32
    return %c0_i32, %arg1 : i32, i32
  }
  func.func @transform_3(%arg0: i32, %arg1: i32) -> (i32, i32) {
    %c0_i32 = arith.constant 0 : i32
    return %arg0, %arg1 : i32, i32
  }
}

</mosaic_0001>

<bundles_post_ra>
// kernel: tpu_custom_call.1
= control target key start
LH: loop header
LB: loop body
LE: loop exit
PB: predicated region body
PF: predicated region fallthrough
CT: control target
= control target key end

     0   :  { %8 = vsyncpa [#allocation3], 0  ;;  %s4514_s0 = inlined_call_operand.hbm [shape: bf16[2048,147], index: 0, kind: input, shape index: {}]   ;;  %s4515_s1 = inlined_call_operand.hbm [shape: bf16[147,64], index: 1, kind: input, shape index: {}]   ;;  %s4516_s2 = inlined_call_operand.hbm [shape: f32[1,64], index: 2, kind: input, shape index: {}]   ;;  %s4517_s3 = inlined_call_operand.hbm [shape: bf16[2048,64], index: 3, kind: output, shape index: {}]  }
   0x1   :  { %10 = vsyncpa [#allocation3 + $0x1], 0 }
   0x2   :  { %11 = vsyncpa [#allocation6], 0 }
   0x3   :  { %12 = vsyncpa [#allocation4], 0 }
   0x4   :  { %14 = vsyncpa [#allocation4 + $0x1], 0  ;;  %s3672_s12 = smov 0   ;;  %s3674_s13 = smov 0  }
   0x5   :  { %s3676_s14 = smov 0   ;;  %s3678_s15 = smov 0  }
   0x6   :  { %s3680_s16 = smov 0   ;;  %s3682_s17 = smov 0  }
   0x7 LB: > { %s2670_s18 = sadd.s32 4294967295, %s3638_s17   ;;  %s2671_s19 = sadd.s32 4294967294, %s3638_s17   ;;  %s3638_s17 = sphi %s3682_s17, %s20_s17   ;;  %s3634_s16 = sphi %s3680_s16, %s4539_s16   ;;  %s3630_s15 = sphi %s3678_s15, %s4538_s15   ;;  %s3626_s14 = sphi %s3676_s14, %s4537_s14   ;;  %s3622_s13 = sphi %s3674_s13, %s4536_s13   ;;  %s3618_s12 = sphi %s3672_s12, %s4535_s12  }
   0x8   : > { %p52_p0 = scmp.ne.s32.totalorder %s3622_s13, %s3618_s12  ;;  %p3706_p1 = scmp.eq.s32.totalorder %s2670_s18, 0 }
   0x9   : > { %p3710_p2 = scmp.eq.s32.totalorder %s2670_s18, 1  ;;  %p136_p3 = scmp.eq.s32.totalorder %s2671_s19, 1 }
   0xa   : > { %s4522_s20 = scalar_select %p3706_p1, 1, 0 }
   0xb   : > { %p3716_p4 = por %p3706_p1, %p52_p0  ;;  %p2672_p5 = scmp.ge.s32.totalorder %s3638_s17, 1 }
   0xc   : > { %p3721_p6 = por %p136_p3, %p52_p0  ;;  %p143_p7 = scmp.lt.s32.totalorder %s3638_s17, 3 }
   0xd   : > { %s4524_s22 = scalar_select %p3716_p4, 1, 0 }
   0xe   : > { %s4525_s23 = scalar_select %p3721_p6, 1, 0 }
   0xf   : > { %p3726_p8 = pnand %p2672_p5, %p143_p7  ;;  %s3640_s25 = smov [#allocation5]  }
  0x10   : > { %s157_s26 = sshll.u32 %s3640_s25, 4  ;;  %s3641_s28 = smov [#allocation7]   ;;  %s3730_s26 = int_to_ptr.vmem [resolvable:$true] %s157_s26 }
  0x11   : > { %p3184_p9 = pneg %p3726_p8  ;;  %s173_s29 = sshll.u32 %s3641_s28, 4  ;;  %s3741_s29 = int_to_ptr.vmem [resolvable:$true] %s173_s29 }
  0x12   : > { %s3466_s5 = scalar_lea.hbm %s4515_s1, 1216 }
  0x13   : > { %p3737_p11 = pnand %p3184_p9, %p3706_p1  ;;  %p3467_p12 = scmp.ne.s32.totalorder %s4515_s1, %s3466_s5 }
  0x14   : > { %p3473_p5 = scmp.lt.u32.totalorder %s3466_s5, %s4515_s1 }
  0x15   : > { %p3468_p13 = pneg %p3737_p11 }
  0x17   : > { %p3469_p0 = pnand %p3468_p13, %p3467_p12 }
  0x19   : > { %p3470_p3 = pneg %p3469_p0 }
  0x1b   : > { %p3475_p7 = pnand %p3473_p5, %p3470_p3 }
  0x1d   : > { %3478 = shalt.err (!%p3475_p7)
}
  0x1e   : > { %s3479_s10 = scalar_lea.vmem %s3730_s26, 1216  ;;  %p3487_p1 = scmp.lt.s32.totalorder %s3730_s26, %s3730_s26 }
  0x1f   : > { %p3480_p9 = scmp.ne.s32.totalorder %s3730_s26, %s3479_s10  ;;  %p3488_p12 = scmp.lt.s32.totalorder %s3479_s10, %s3479_s10 }
  0x21   : > { %p3482_p10 = pnand %p3480_p9, %p3468_p13  ;;  %p3489_p0 = por %p3488_p12, %p3487_p1 }
  0x23   : > { %p3483_p6 = pneg %p3482_p10 }
  0x25   : > { %p3490_p4 = pnand %p3489_p0, %p3483_p6 }
  0x27   : > { %3493 = shalt.err (!%p3490_p4)
}
  0x28   : > { %s3642_s11 = smov 64   ;;  %s3643_s18 = smov 4  }
  0x29   : > { %3187 = dma.hbm_to_vmem [thread:$0]  (!%p3737_p11), %s4515_s1, 1216, %s3730_s26, [#allocation6], %s3642_s11, %s3642_s11, %s3643_s18  }
  0x2a   : > { %s3494_s4 = scalar_lea.hbm %s4516_s2, 16 }
  0x2b   : > { %p3495_p1 = scmp.ne.s32.totalorder %s4516_s2, %s3494_s4  ;;  %p3501_p10 = scmp.lt.u32.totalorder %s3494_s4, %s4516_s2 }
  0x2d   : > { %p3497_p4 = pnand %p3495_p1, %p3468_p13 }
  0x2f   : > { %p3498_p6 = pneg %p3497_p4 }
  0x31   : > { %p3503_p3 = pnand %p3501_p10, %p3498_p6 }
  0x33   : > { %3506 = shalt.err (!%p3503_p3)
}
  0x34   : > { %s3507_s26 = scalar_lea.vmem %s3741_s29, 16  ;;  %s3514_s9 = scalar_lea.vmem %s3741_s29, 32 }
  0x35   : > { %p3508_p5 = scmp.ne.s32.totalorder %s3741_s29, %s3507_s26  ;;  %p3515_p12 = scmp.lt.s32.totalorder %s3741_s29, %s3741_s29 }
  0x36   : > { %p3516_p0 = scmp.lt.s32.totalorder %s3514_s9, %s3507_s26 }
  0x37   : > { %p3510_p7 = pnand %p3508_p5, %p3468_p13 }
  0x38   : > { %p3517_p1 = por %p3516_p0, %p3515_p12 }
  0x39   : > { %p3511_p9 = pneg %p3510_p7 }
  0x3b   : > { %p3518_p4 = pnand %p3517_p1, %p3511_p9 }
  0x3d   : > { %3521 = shalt.err (!%p3518_p4)
}
  0x3e   : > { %3190 = dma.hbm_to_vmem [thread:$0]  (!%p3737_p11), %s4516_s2, 16, %s3741_s29, [#allocation6]  }
  0x3f   : > { %s32_s18 = sadd.s32 1, %s3634_s16  ;;  %s39_s19 = sadd.s32 1, %s3626_s14 }
  0x40   : > { %p34_p13 = scmp.ge.s32.totalorder %s32_s18, 2  ;;  %p46_p6 = scmp.ne.s32.totalorder %s3626_s14, %s3622_s13 }
  0x41   : > { %p47_p10 = scmp.eq.s32.totalorder %s3638_s17, 0  ;;  %p3201_p3 = scmp.lt.s32.totalorder %s3638_s17, 2 }
  0x42   : > { %s4541_s18 = smov (%p34_p13, %s32_s18), 0  ;;  %p3806_p7 = por %p3710_p2, %p46_p6 }
  0x43   : > { %p48_p5 = por %p47_p10, %p46_p6  ;;  %s36_s25 = ssub.s32 %s3634_s16, %s4541_s18 }
  0x44   : > { %s4528_s27 = scalar_select %p3806_p7, 1, 0 }
  0x45   : > { %s184_s28 = sand.u32 1, %s3626_s14   ;;  %p37_p9 = scmp.eq.s32.totalorder %s36_s25, 0 }
  0x46   : > { %s2676_s29 = sshll.u32 %s184_s28, 10  ;;  %s3022_s30 = sshll.u32 %s3634_s16, 14 }
  0x47   : > { %s3815_s4 = scalar_select %p37_p9, %s3626_s14, %s39_s19  }
  0x48   : > { %s3820_s7 = scalar_lea.hbm %s4514_s0, %s3022_s30  ;;  %s188_s21 = scalar_lea.vmem [#allocation2], %s2676_s29 }
  0x49   : > { %s196_s8 = sshll.u32 %s188_s21, 4  ;;  %p3824_p2 = pnand %p3201_p3, %p48_p5  ;;  %s3828_s8 = int_to_ptr.vmem [resolvable:$true] %s196_s8 }
  0x4a   : > { %s3830_s9 = scalar_lea.sflag [#allocation3], %s184_s28  ;;  %s3522_s10 = scalar_lea.hbm %s3820_s7, 16384 }
  0x4b   : > { %p3523_p11 = scmp.ne.s32.totalorder %s3820_s7, %s3522_s10  ;;  %p3524_p12 = pneg %p3824_p2 }
  0x4c   : > { %s3527_s25 = scalar_lea.hbm %s4514_s0, 32768  ;;  %p3528_p4 = scmp.lt.u32.totalorder %s3820_s7, %s4514_s0 }
  0x4d   : > { %p3525_p0 = pnand %p3524_p12, %p3523_p11  ;;  %p3529_p13 = scmp.lt.u32.totalorder %s3527_s25, %s3522_s10 }
  0x4e   : > { %p3531_p10 = scmp.lt.u32.totalorder %s3522_s10, %s3820_s7 }
  0x4f   : > { %p3526_p1 = pneg %p3525_p0  ;;  %p3530_p6 = por %p3529_p13, %p3528_p4 }
  0x51   : > { %p3532_p3 = por %p3531_p10, %p3530_p6 }
  0x53   : > { %p3533_p5 = pnand %p3532_p3, %p3526_p1 }
  0x55   : > { %3536 = shalt.err (!%p3533_p5)
}
  0x56   : > { %s3537_s28 = scalar_lea.vmem %s3828_s8, 16384  ;;  %s3644_s5 = smov [#allocation2]  }
  0x57   : > { %p3538_p9 = scmp.ne.s32.totalorder %s3828_s8, %s3537_s28  ;;  %s3542_s6 = sshll.u32 %s3644_s5, 4  ;;  %s3543_s6 = int_to_ptr.vmem [resolvable:$false] %s3542_s6 }
  0x58   : > { %s3544_s21 = scalar_lea.vmem %s3543_s6, 32768  ;;  %p3545_p7 = scmp.lt.s32.totalorder %s3828_s8, %s3543_s6 }
  0x59   : > { %p3540_p11 = pnand %p3538_p9, %p3524_p12  ;;  %p3546_p4 = scmp.lt.s32.totalorder %s3544_s21, %s3537_s28 }
  0x5b   : > { %p3541_p0 = pneg %p3540_p11  ;;  %p3547_p13 = por %p3546_p4, %p3545_p7 }
  0x5d   : > { %p3548_p6 = pnand %p3547_p13, %p3541_p0 }
  0x5f   : > { %3551 = shalt.err (!%p3548_p6)
}
  0x60   : > { %s3645_s10 = smov 128   ;;  %s3646_s11 = smov 8  }
  0x61   : > { %3194 = dma.hbm_to_vmem [thread:$0]  (!%p3824_p2), %s3820_s7, 16384, %s3828_s8, %s3830_s9, %s3645_s10, %s3645_s10, %s3646_s11  }
  0x62   : > { %208 = sbr.rel (%p3726_p8) target bundleno = 633 (0x279), region = 32  ;;  %s3861_s19 = sand.u32 (!%p3726_p8), 1, %s3622_s13  }
  0x63   : > { %s2681_s25 = sshll.u32 (!%p3726_p8), %s3861_s19, 10  ;;  %s211_s29 = scalar_lea.sflag (!%p3726_p8), [#allocation3], %s3861_s19 }
  0x64   : > { %s3865_s30 = scalar_lea.vmem (!%p3726_p8), [#allocation2], %s2681_s25  ;;  %p4530_p7 = scmp.ne.s32.totalorder (!%p3726_p8), %s4524_s22, 0 }
  0x69   : > { %3605 = dma.done.wait (%p4530_p7), %s211_s29, 16384  }
  0x6a   : > { %3607 = vsyncadd (%p4530_p7), %s211_s29, 4294950912  ;;  %p4531_p2 = scmp.ne.s32.totalorder %s4522_s20, 0 }
  0x6c   : > { %3609 = dma.done.wait (%p4531_p2), [#allocation6], 1232  }
  0x6d   : > { %3611 = vsyncadd (%p4531_p2), [#allocation6], 4294966064  ;;  %v3647_v0 = vmov 0   ;;  %v3263_v1 = vld [vmem:[#allocation5] sm:$0xff]   ;;  %v3264_v2 = vld [vmem:[#allocation5 + $0x8] sm:$0xff]   ;;  %vm1035_vm0 = vcmask 154624  }
  0x6e   : > { %1235 = vmatprep.subr.bf16.mxu0 %v3647_v0  ;;  %3152 = vmatprep.subr.bf16.mxu1 %v3647_v0  ;;  %v3265_v3 = vld [vmem:[#allocation5 + $0x10] sm:$0xff]   ;;  %v3266_v4 = vld [vmem:[#allocation5 + $0x18] sm:$0xff]   ;;  %v3275_v5 = vld [vmem:[%s3865_s30 + $0x4] ss:$8 sps:$4 sm:$0xff]   ;;  %vm1228_vm1 = vcmask 1040384   ;;  %vm1229_vm2 = vcmask 1041408  }
  0x6f   : > { %1236 = vmatpush1.bf16.msra.mxu0 %v3263_v1  ;;  %3162 = vmatpush1.bf16.msra.mxu1 %v3263_v1  ;;  %v3278_v6 = vld [vmem:[%s3865_s30 + $0x204] ss:$8 sps:$4 sm:$0xff]   ;;  %v3269_v9 = vld [vmem:[#allocation5 + $0x30] sm:$0xff]   ;;  %v3270_v10 = vld [vmem:[#allocation5 + $0x38] sm:$0xff]   ;;  %v3648_v11 = vmov 65535   ;;  %s2684_s20 = sshll.u32 %s3861_s19, 9 }
  0x70   : > { %1237 = vmatprep.subr.bf16.mxu0 %v3647_v0  ;;  %3153 = vmatprep.subr.bf16.mxu1 %v3647_v0  ;;  %v3267_v7 = vld [vmem:[#allocation5 + $0x20] sm:$0xff]   ;;  %v3268_v8 = vld [vmem:[#allocation5 + $0x28] sm:$0xff]   ;;  %v1230_v12 = vsel %vm1228_vm1, 4294967295, %v3648_v11  ;;  %v3279_v19 = vld [vmem:[%s3865_s30 + $0x14] ss:$8 sps:$4 sm:$0xff]   ;;  %vm2420_vm3 = vcmask 519168  }
  0x71   : > { %2824 = vmatprep.mubr.msk.bf16.mxu0 %vm1035_vm0, %v3275_v5  ;;  %2856 = vmatprep.mubr.msk.bf16.mxu1 %vm1035_vm0, %v3278_v6  ;;  %v3271_v13 = vld [vmem:[#allocation5 + $0x40] sm:$0xff]   ;;  %v3272_v14 = vld [vmem:[#allocation5 + $0x48] ss:$0 sps:$4 sm:$0x33]   ;;  %v1231_v15 = vsel %vm1229_vm2, %v1230_v12, 0  ;;  %s4054_s22 = scalar_lea.vmem [#allocation8], %s2684_s20 }
  0x72   : > { %v1233_v16 = vand.u32 %v3272_v14, %v1231_v15  ;;  %v3273_v17 = vld [vmem:[%s3865_s30] ss:$8 sps:$4 sm:$0xff]   ;;  %v3281_v20 = vld [vmem:[%s3865_s30 + $0x214] ss:$8 sps:$4 sm:$0xff]   ;;  %v3283_v21 = vld [vmem:[%s3865_s30 + $0x10] ss:$8 sps:$4 sm:$0xff]  }
  0x73   : > { %1238 = vmatpush1.bf16.msra.mxu0 %v3264_v2  ;;  %3163 = vmatpush1.bf16.msra.mxu1 %v3264_v2  ;;  %v3276_v18 = vld [vmem:[%s3865_s30 + $0x200] ss:$8 sps:$4 sm:$0xff]   ;;  %v3284_v22 = vld [vmem:[%s3865_s30 + $0x210] ss:$8 sps:$4 sm:$0xff]   ;;  %v3285_v23 = vld [vmem:[%s3865_s30 + $0x24] ss:$8 sps:$4 sm:$0xff]  }
  0x74   : > { %1239 = vmatprep.subr.bf16.mxu0 %v3647_v0  ;;  %3154 = vmatprep.subr.bf16.mxu1 %v3647_v0  ;;  %v3287_v24 = vld [vmem:[%s3865_s30 + $0x224] ss:$8 sps:$4 sm:$0xff]   ;;  %v3289_v25 = vld [vmem:[%s3865_s30 + $0x20] ss:$8 sps:$4 sm:$0xff]   ;;  %v3291_v27 = vld [vmem:[%s3865_s30 + $0x34] ss:$8 sps:$4 sm:$0xff]  }
  0x75   : > { %v3290_v26 = vld [vmem:[%s3865_s30 + $0x220] ss:$8 sps:$4 sm:$0xff]   ;;  %v3293_v28 = vld [vmem:[%s3865_s30 + $0x234] ss:$8 sps:$4 sm:$0xff]   ;;  %v3295_v29 = vld [vmem:[%s3865_s30 + $0x30] ss:$8 sps:$4 sm:$0xff]  }
  0x76   : > { %v3296_v30 = vld [vmem:[%s3865_s30 + $0x230] ss:$8 sps:$4 sm:$0xff]   ;;  %v3297_v31 = vld [vmem:[%s3865_s30 + $0x44] ss:$8 sps:$4 sm:$0xff]   ;;  %v3301_v33 = vld [vmem:[%s3865_s30 + $0x40] ss:$8 sps:$4 sm:$0xff]  }
  0x77   : > { %1240 = vmatpush1.bf16.msra.mxu0 %v3265_v3  ;;  %3164 = vmatpush1.bf16.msra.mxu1 %v3265_v3  ;;  %v3299_v32 = vld [vmem:[%s3865_s30 + $0x244] ss:$8 sps:$4 sm:$0xff]   ;;  %v3302_v34 = vld [vmem:[%s3865_s30 + $0x240] ss:$8 sps:$4 sm:$0xff]   ;;  %v3303_v35 = vld [vmem:[%s3865_s30 + $0x54] ss:$8 sps:$4 sm:$0xff]  }
  0x78   : > { %1241 = vmatprep.subr.bf16.mxu0 %v3647_v0  ;;  %3155 = vmatprep.subr.bf16.mxu1 %v3647_v0  ;;  %v3305_v36 = vld [vmem:[%s3865_s30 + $0x254] ss:$8 sps:$4 sm:$0xff]   ;;  %v3307_v37 = vld [vmem:[%s3865_s30 + $0x50] ss:$8 sps:$4 sm:$0xff]   ;;  %v3309_v39 = vld [vmem:[%s3865_s30 + $0x64] ss:$8 sps:$4 sm:$0xff]  }
  0x79   : > { %v3308_v38 = vld [vmem:[%s3865_s30 + $0x250] ss:$8 sps:$4 sm:$0xff]   ;;  %v3311_v40 = vld [vmem:[%s3865_s30 + $0x264] ss:$8 sps:$4 sm:$0xff]   ;;  %v3313_v41 = vld [vmem:[%s3865_s30 + $0x60] ss:$8 sps:$4 sm:$0xff]  }
  0x7a   : > { %v3314_v42 = vld [vmem:[%s3865_s30 + $0x260] ss:$8 sps:$4 sm:$0xff]   ;;  %v3315_v43 = vld [vmem:[%s3865_s30 + $0x74] ss:$8 sps:$4 sm:$0xff]   ;;  %v3319_v45 = vld [vmem:[%s3865_s30 + $0x70] ss:$8 sps:$4 sm:$0xff]  }
  0x7b   : > { %1242 = vmatpush1.bf16.msra.mxu0 %v3266_v4  ;;  %3165 = vmatpush1.bf16.msra.mxu1 %v3266_v4  ;;  %v3317_v44 = vld [vmem:[%s3865_s30 + $0x274] ss:$8 sps:$4 sm:$0xff]   ;;  %v3320_v46 = vld [vmem:[%s3865_s30 + $0x270] ss:$8 sps:$4 sm:$0xff]   ;;  %v3321_v47 = vld [vmem:[%s3865_s30 + $0x84] ss:$8 sps:$4 sm:$0xff]  }
  0x7c   : > { %1243 = vmatprep.subr.bf16.mxu0 %v3647_v0  ;;  %3156 = vmatprep.subr.bf16.mxu1 %v3647_v0  ;;  %v3323_v48 = vld [vmem:[%s3865_s30 + $0x284] ss:$8 sps:$4 sm:$0xff]   ;;  %v3325_v49 = vld [vmem:[%s3865_s30 + $0x80] ss:$8 sps:$4 sm:$0xff]   ;;  %v3327_v51 = vld [vmem:[%s3865_s30 + $0x94] ss:$8 sps:$4 sm:$0xff]  }
  0x7d   : > { %v3326_v50 = vld [vmem:[%s3865_s30 + $0x280] ss:$8 sps:$4 sm:$0xff]   ;;  %v3329_v52 = vld [vmem:[%s3865_s30 + $0x294] ss:$8 sps:$4 sm:$0xff]   ;;  %v3331_v53 = vld [vmem:[%s3865_s30 + $0x90] ss:$8 sps:$4 sm:$0xff]  }
  0x7e   : > { %v3332_v54 = vld [vmem:[%s3865_s30 + $0x290] ss:$8 sps:$4 sm:$0xff]   ;;  %v3333_v55 = vld [vmem:[%s3865_s30 + $0xa4] ss:$8 sps:$4 sm:$0xff]   ;;  %v3337_v57 = vld [vmem:[%s3865_s30 + $0xa0] ss:$8 sps:$4 sm:$0xff]  }
  0x7f   : > { %1244 = vmatpush1.bf16.msra.mxu0 %v3267_v7  ;;  %3166 = vmatpush1.bf16.msra.mxu1 %v3267_v7  ;;  %v3335_v56 = vld [vmem:[%s3865_s30 + $0x2a4] ss:$8 sps:$4 sm:$0xff]   ;;  %v3338_v58 = vld [vmem:[%s3865_s30 + $0x2a0] ss:$8 sps:$4 sm:$0xff]   ;;  %v3339_v59 = vld [vmem:[%s3865_s30 + $0xb4] ss:$8 sps:$4 sm:$0xff]  }
  0x80   : > { %1245 = vmatprep.subr.bf16.mxu0 %v3647_v0  ;;  %3157 = vmatprep.subr.bf16.mxu1 %v3647_v0  ;;  %v3341_v60 = vld [vmem:[%s3865_s30 + $0x2b4] ss:$8 sps:$4 sm:$0xff]   ;;  %v3343_v61 = vld [vmem:[%s3865_s30 + $0xb0] ss:$8 sps:$4 sm:$0xff]   ;;  %v3345_v63 = vld [vmem:[%s3865_s30 + $0xc4] ss:$8 sps:$4 sm:$0xff]  }
  0x81   : > { %v3344_v62 = vld [vmem:[%s3865_s30 + $0x2b0] ss:$8 sps:$4 sm:$0xff]   ;;  %v3349_v1 = vld [vmem:[%s3865_s30 + $0xc0] ss:$8 sps:$4 sm:$0xff]   ;;  %v3351_v3 = vld [vmem:[%s3865_s30 + $0xd4] ss:$8 sps:$4 sm:$0xff]  }
  0x82   : > { %v3350_v2 = vld [vmem:[%s3865_s30 + $0x2c0] ss:$8 sps:$4 sm:$0xff]   ;;  %v3353_v4 = vld [vmem:[%s3865_s30 + $0x2d4] ss:$8 sps:$4 sm:$0xff]   ;;  %v3355_v5 = vld [vmem:[%s3865_s30 + $0xd0] ss:$8 sps:$4 sm:$0xff]  }
  0x83   : > { %1246 = vmatpush1.bf16.msra.mxu0 %v3268_v8  ;;  %3167 = vmatpush1.bf16.msra.mxu1 %v3268_v8  ;;  %v3356_v6 = vld [vmem:[%s3865_s30 + $0x2d0] ss:$8 sps:$4 sm:$0xff]   ;;  %v3357_v7 = vld [vmem:[%s3865_s30 + $0xe4] ss:$8 sps:$4 sm:$0xff]   ;;  %v3363_v11 = vld [vmem:[%s3865_s30 + $0xf4] ss:$8 sps:$4 sm:$0xff]  }
  0x84   : > { %1247 = vmatprep.subr.bf16.mxu0 %v3647_v0  ;;  %3158 = vmatprep.subr.bf16.mxu1 %v3647_v0  ;;  %v3359_v8 = vld [vmem:[%s3865_s30 + $0x2e4] ss:$8 sps:$4 sm:$0xff]   ;;  %v3365_v12 = vld [vmem:[%s3865_s30 + $0x2f4] ss:$8 sps:$4 sm:$0xff]   ;;  %v3368_v14 = vld [vmem:[%s3865_s30 + $0x2f0] ss:$8 sps:$4 sm:$0xff]  }
  0x85   : > { %v3369_v15 = vld [vmem:[%s3865_s30 + $0x104] ss:$8 sps:$4 sm:$0xff]   ;;  %s3151_s24 = sshll.u32 %s3630_s15, 13  ;;  %s2564_s7 = sshll.u32 %s4054_s22, 4  ;;  %s4457_s7 = int_to_ptr.vmem [resolvable:$true] %s2564_s7 }
  0x86   : > { %s4455_s9 = scalar_lea.hbm %s4517_s3, %s3151_s24  ;;  %s2550_s15 = scalar_lea.sflag [#allocation4], %s3861_s19 }
  0x87   : > { %1248 = vmatpush1.bf16.msra.mxu0 %v3269_v9  ;;  %3168 = vmatpush1.bf16.msra.mxu1 %v3269_v9  ;;  %v3361_v9 = vld [vmem:[%s3865_s30 + $0xe0] ss:$8 sps:$4 sm:$0xff]   ;;  %s3552_s28 = scalar_lea.vmem %s4457_s7, 8192  ;;  %p4532_p12 = scmp.ne.s32.totalorder %s4528_s27, 0 }
  0x88   : > { %1249 = vmatprep.subr.bf16.mxu0 %v3647_v0  ;;  %3159 = vmatprep.subr.bf16.mxu1 %v3647_v0  ;;  %p3553_p8 = scmp.ne.s32.totalorder %s4457_s7, %s3552_s28  ;;  %s3649_s5 = smov [#allocation8]  }
  0x89   : > { %s3556_s6 = sshll.u32 %s3649_s5, 4  ;;  %s3557_s6 = int_to_ptr.vmem [resolvable:$false] %s3556_s6 }
  0x8a   : > { %p3554_p1 = pnand %p3553_p8, %p4532_p12  ;;  %s3558_s21 = scalar_lea.vmem %s3557_s6, 16384 }
  0x8b   : > { %1250 = vmatpush1.bf16.msra.mxu0 %v3270_v10  ;;  %3169 = vmatpush1.bf16.msra.mxu1 %v3270_v10  ;;  %v3362_v10 = vld [vmem:[%s3865_s30 + $0x2e0] ss:$8 sps:$4 sm:$0xff]   ;;  %p3559_p3 = scmp.lt.s32.totalorder %s4457_s7, %s3557_s6  ;;  %p3560_p5 = scmp.lt.s32.totalorder %s3558_s21, %s3552_s28 }
  0x8c   : > { %1251 = vmatprep.subr.bf16.mxu0 %v3647_v0  ;;  %3160 = vmatprep.subr.bf16.mxu1 %v3647_v0  ;;  %p3555_p10 = pneg %p3554_p1 }
  0x8d   : > { %p3561_p9 = por %p3560_p5, %p3559_p3 }
  0x8f   : > { %1252 = vmatpush1.bf16.msra.mxu0 %v3271_v13  ;;  %3170 = vmatpush1.bf16.msra.mxu1 %v3271_v13  ;;  %v3367_v13 = vld [vmem:[%s3865_s30 + $0xf0] ss:$8 sps:$4 sm:$0xff]   ;;  %p3562_p11 = pnand %p3561_p9, %p3555_p10 }
  0x90   : > { %1253 = vmatprep.subr.bf16.mxu0 %v3647_v0  ;;  %3161 = vmatprep.subr.bf16.mxu1 %v3647_v0  ;;  %v3347_v0 = vld [vmem:[%s3865_s30 + $0x2c4] ss:$8 sps:$4 sm:$0xff]  }
  0x93   : > { %1254 = vmatpush1.bf16.msra.mxu0 %v1233_v16  ;;  %3171 = vmatpush1.bf16.msra.mxu1 %v1233_v16  ;;  %v3371_v16 = vld [vmem:[%s3865_s30 + $0x304] ss:$8 sps:$4 sm:$0xff]  }
  0x96   : > { %1268 = vmatmul.mubr.bf16.vlgmr.msra.gmra.mrb[0].mxu0 %v3273_v17  ;;  %1524 = vmatmul.mubr.bf16.vlgmr.msra.gmra.mrb[0].mxu1 %v3276_v18  ;;  %v3373_v17 = vld [vmem:[%s3865_s30 + $0x100] ss:$8 sps:$4 sm:$0xff]  }
  0x97   : > { %2825 = vmatprep.mubr.msk.bf16.mxu0 %vm1035_vm0, %v3279_v19  ;;  %2857 = vmatprep.mubr.msk.bf16.mxu1 %vm1035_vm0, %v3281_v20  ;;  %v3374_v18 = vld [vmem:[%s3865_s30 + $0x300] ss:$8 sps:$4 sm:$0xff]   ;;  %v3375_v19 = vld [vmem:[%s3865_s30 + $0x114] ss:$8 sps:$4 sm:$0xff]  }
  0x98   : > { %v3377_v20 = vld [vmem:[%s3865_s30 + $0x314] ss:$8 sps:$4 sm:$0xff]  }
  0x9e   : > { %1276 = vmatmul.mubr.bf16.gmra.mrb[4].mxu0 %v3283_v21  ;;  %1532 = vmatmul.mubr.bf16.gmra.mrb[4].mxu1 %v3284_v22  ;;  %v3379_v21 = vld [vmem:[%s3865_s30 + $0x110] ss:$8 sps:$4 sm:$0xff]  }
  0x9f   : > { %2826 = vmatprep.mubr.msk.bf16.mxu0 %vm1035_vm0, %v3285_v23  ;;  %2858 = vmatprep.mubr.msk.bf16.mxu1 %vm1035_vm0, %v3287_v24  ;;  %v3380_v22 = vld [vmem:[%s3865_s30 + $0x310] ss:$8 sps:$4 sm:$0xff]   ;;  %v3381_v23 = vld [vmem:[%s3865_s30 + $0x124] ss:$8 sps:$4 sm:$0xff]  }
  0xa0   : > { %v3383_v24 = vld [vmem:[%s3865_s30 + $0x324] ss:$8 sps:$4 sm:$0xff]  }
  0xa6   : > { %1284 = vmatmul.mubr.bf16.gmra.mrb[8].mxu0 %v3289_v25  ;;  %1540 = vmatmul.mubr.bf16.gmra.mrb[8].mxu1 %v3290_v26  ;;  %v3385_v25 = vld [vmem:[%s3865_s30 + $0x120] ss:$8 sps:$4 sm:$0xff]  }
  0xa7   : > { %2827 = vmatprep.mubr.msk.bf16.mxu0 %vm1035_vm0, %v3291_v27  ;;  %2859 = vmatprep.mubr.msk.bf16.mxu1 %vm1035_vm0, %v3293_v28  ;;  %v3386_v26 = vld [vmem:[%s3865_s30 + $0x320] ss:$8 sps:$4 sm:$0xff]   ;;  %v3387_v27 = vld [vmem:[%s3865_s30 + $0x134] ss:$8 sps:$4 sm:$0xff]  }
  0xa8   : > { %v3389_v28 = vld [vmem:[%s3865_s30 + $0x334] ss:$8 sps:$4 sm:$0xff]  }
  0xae   : > { %1292 = vmatmul.mubr.bf16.gmra.mrb[12].mxu0 %v3295_v29  ;;  %1548 = vmatmul.mubr.bf16.gmra.mrb[12].mxu1 %v3296_v30  ;;  %v3391_v29 = vld [vmem:[%s3865_s30 + $0x130] ss:$8 sps:$4 sm:$0xff]  }
  0xaf   : > { %2828 = vmatprep.mubr.msk.bf16.mxu0 %vm1035_vm0, %v3297_v31  ;;  %2860 = vmatprep.mubr.msk.bf16.mxu1 %vm1035_vm0, %v3299_v32  ;;  %v3392_v30 = vld [vmem:[%s3865_s30 + $0x330] ss:$8 sps:$4 sm:$0xff]   ;;  %v3393_v31 = vld [vmem:[%s3865_s30 + $0x144] ss:$8 sps:$4 sm:$0xff]  }
  0xb0   : > { %v3395_v32 = vld [vmem:[%s3865_s30 + $0x344] ss:$8 sps:$4 sm:$0xff]  }
  0xb6   : > { %1300 = vmatmul.mubr.bf16.gmra.mrb[16].mxu0 %v3301_v33  ;;  %1556 = vmatmul.mubr.bf16.gmra.mrb[16].mxu1 %v3302_v34  ;;  %v3397_v33 = vld [vmem:[%s3865_s30 + $0x140] ss:$8 sps:$4 sm:$0xff]  }
  0xb7   : > { %2829 = vmatprep.mubr.msk.bf16.mxu0 %vm1035_vm0, %v3303_v35  ;;  %2861 = vmatprep.mubr.msk.bf16.mxu1 %vm1035_vm0, %v3305_v36  ;;  %v3398_v34 = vld [vmem:[%s3865_s30 + $0x340] ss:$8 sps:$4 sm:$0xff]   ;;  %v3399_v35 = vld [vmem:[%s3865_s30 + $0x154] ss:$8 sps:$4 sm:$0xff]  }
  0xb8   : > { %v3401_v36 = vld [vmem:[%s3865_s30 + $0x354] ss:$8 sps:$4 sm:$0xff]  }
  0xbe   : > { %1308 = vmatmul.mubr.bf16.gmra.mrb[20].mxu0 %v3307_v37  ;;  %1564 = vmatmul.mubr.bf16.gmra.mrb[20].mxu1 %v3308_v38  ;;  %v3403_v37 = vld [vmem:[%s3865_s30 + $0x150] ss:$8 sps:$4 sm:$0xff]  }
  0xbf   : > { %2830 = vmatprep.mubr.msk.bf16.mxu0 %vm1035_vm0, %v3309_v39  ;;  %2862 = vmatprep.mubr.msk.bf16.mxu1 %vm1035_vm0, %v3311_v40  ;;  %v3404_v38 = vld [vmem:[%s3865_s30 + $0x350] ss:$8 sps:$4 sm:$0xff]   ;;  %v3405_v39 = vld [vmem:[%s3865_s30 + $0x164] ss:$8 sps:$4 sm:$0xff]  }
  0xc0   : > { %v3407_v40 = vld [vmem:[%s3865_s30 + $0x364] ss:$8 sps:$4 sm:$0xff]  }
  0xc6   : > { %1316 = vmatmul.mubr.bf16.gmra.mrb[24].mxu0 %v3313_v41  ;;  %1572 = vmatmul.mubr.bf16.gmra.mrb[24].mxu1 %v3314_v42  ;;  %v3409_v41 = vld [vmem:[%s3865_s30 + $0x160] ss:$8 sps:$4 sm:$0xff]  }
  0xc7   : > { %2831 = vmatprep.mubr.msk.bf16.mxu0 %vm1035_vm0, %v3315_v43  ;;  %2863 = vmatprep.mubr.msk.bf16.mxu1 %vm1035_vm0, %v3317_v44  ;;  %v3410_v42 = vld [vmem:[%s3865_s30 + $0x360] ss:$8 sps:$4 sm:$0xff]   ;;  %v3411_v43 = vld [vmem:[%s3865_s30 + $0x174] ss:$8 sps:$4 sm:$0xff]  }
  0xc8   : > { %v3413_v44 = vld [vmem:[%s3865_s30 + $0x374] ss:$8 sps:$4 sm:$0xff]  }
  0xce   : > { %1324 = vmatmul.mubr.bf16.gmra.mrb[28].mxu0 %v3319_v45  ;;  %1580 = vmatmul.mubr.bf16.gmra.mrb[28].mxu1 %v3320_v46  ;;  %v3415_v45 = vld [vmem:[%s3865_s30 + $0x170] ss:$8 sps:$4 sm:$0xff]  }
  0xcf   : > { %2832 = vmatprep.mubr.msk.bf16.mxu0 %vm1035_vm0, %v3321_v47  ;;  %2864 = vmatprep.mubr.msk.bf16.mxu1 %vm1035_vm0, %v3323_v48  ;;  %v3416_v46 = vld [vmem:[%s3865_s30 + $0x370] ss:$8 sps:$4 sm:$0xff]   ;;  %v3417_v47 = vld [vmem:[%s3865_s30 + $0x184] ss:$8 sps:$4 sm:$0xff]  }
  0xd0   : > { %v3419_v48 = vld [vmem:[%s3865_s30 + $0x384] ss:$8 sps:$4 sm:$0xff]  }
  0xd6   : > { %1332 = vmatmul.mubr.bf16.gmra.mrb[32].mxu0 %v3325_v49  ;;  %1588 = vmatmul.mubr.bf16.gmra.mrb[32].mxu1 %v3326_v50  ;;  %v3421_v49 = vld [vmem:[%s3865_s30 + $0x180] ss:$8 sps:$4 sm:$0xff]  }
  0xd7   : > { %2833 = vmatprep.mubr.msk.bf16.mxu0 %vm1035_vm0, %v3327_v51  ;;  %2865 = vmatprep.mubr.msk.bf16.mxu1 %vm1035_vm0, %v3329_v52  ;;  %v3422_v50 = vld [vmem:[%s3865_s30 + $0x380] ss:$8 sps:$4 sm:$0xff]   ;;  %v3423_v51 = vld [vmem:[%s3865_s30 + $0x194] ss:$8 sps:$4 sm:$0xff]  }
  0xd8   : > { %v3425_v52 = vld [vmem:[%s3865_s30 + $0x394] ss:$8 sps:$4 sm:$0xff]  }
  0xde   : > { %1340 = vmatmul.mubr.bf16.gmra.mrb[36].mxu0 %v3331_v53  ;;  %1596 = vmatmul.mubr.bf16.gmra.mrb[36].mxu1 %v3332_v54  ;;  %v3427_v53 = vld [vmem:[%s3865_s30 + $0x190] ss:$8 sps:$4 sm:$0xff]  }
  0xdf   : > { %2834 = vmatprep.mubr.msk.bf16.mxu0 %vm1035_vm0, %v3333_v55  ;;  %2866 = vmatprep.mubr.msk.bf16.mxu1 %vm1035_vm0, %v3335_v56  ;;  %v3428_v54 = vld [vmem:[%s3865_s30 + $0x390] ss:$8 sps:$4 sm:$0xff]   ;;  %v3429_v55 = vld [vmem:[%s3865_s30 + $0x1a4] ss:$8 sps:$4 sm:$0xff]  }
  0xe0   : > { %v3431_v56 = vld [vmem:[%s3865_s30 + $0x3a4] ss:$8 sps:$4 sm:$0xff]  }
  0xe6   : > { %1348 = vmatmul.mubr.bf16.gmra.mrb[40].mxu0 %v3337_v57  ;;  %1604 = vmatmul.mubr.bf16.gmra.mrb[40].mxu1 %v3338_v58  ;;  %v3433_v57 = vld [vmem:[%s3865_s30 + $0x1a0] ss:$8 sps:$4 sm:$0xff]  }
  0xe7   : > { %2835 = vmatprep.mubr.msk.bf16.mxu0 %vm1035_vm0, %v3339_v59  ;;  %2867 = vmatprep.mubr.msk.bf16.mxu1 %vm1035_vm0, %v3341_v60  ;;  %v3434_v58 = vld [vmem:[%s3865_s30 + $0x3a0] ss:$8 sps:$4 sm:$0xff]   ;;  %v3435_v59 = vld [vmem:[%s3865_s30 + $0x1b4] ss:$8 sps:$4 sm:$0xff]  }
  0xe8   : > { %v3437_v60 = vld [vmem:[%s3865_s30 + $0x3b4] ss:$8 sps:$4 sm:$0xff]  }
  0xee   : > { %1356 = vmatmul.mubr.bf16.gmra.mrb[44].mxu0 %v3343_v61  ;;  %1612 = vmatmul.mubr.bf16.gmra.mrb[44].mxu1 %v3344_v62  ;;  %v4039_v61 = vld [vmem:[#allocation7] ss:$0 sm:$0xff] }
  0xef   : > { %2836 = vmatprep.mubr.msk.bf16.mxu0 %vm1035_vm0, %v3345_v63  ;;  %2868 = vmatprep.mubr.msk.bf16.mxu1 %vm1035_vm0, %v3347_v0 }
  0xf6   : > { %1364 = vmatmul.mubr.bf16.gmra.mrb[48].mxu0 %v3349_v1  ;;  %1620 = vmatmul.mubr.bf16.gmra.mrb[48].mxu1 %v3350_v2 }
  0xf7   : > { %2837 = vmatprep.mubr.msk.bf16.mxu0 %vm1035_vm0, %v3351_v3  ;;  %2869 = vmatprep.mubr.msk.bf16.mxu1 %vm1035_vm0, %v3353_v4  ;;  %v3439_v4 = vld [vmem:[%s3865_s30 + $0x1b0] ss:$8 sps:$4 sm:$0xff]  }
  0xfe   : > { %1372 = vmatmul.mubr.bf16.gmra.mrb[52].mxu0 %v3355_v5  ;;  %1628 = vmatmul.mubr.bf16.gmra.mrb[52].mxu1 %v3356_v6  ;;  %v3440_v5 = vld [vmem:[%s3865_s30 + $0x3b0] ss:$8 sps:$4 sm:$0xff]  }
  0xff   : > { %2838 = vmatprep.mubr.msk.bf16.mxu0 %vm1035_vm0, %v3357_v7  ;;  %2870 = vmatprep.mubr.msk.bf16.mxu1 %vm1035_vm0, %v3359_v8  ;;  %v3441_v8 = vld [vmem:[%s3865_s30 + $0x1c4] ss:$8 sps:$4 sm:$0xff]  }
 0x106   : > { %1380 = vmatmul.mubr.bf16.gmra.mrb[56].mxu0 %v3361_v9  ;;  %1636 = vmatmul.mubr.bf16.gmra.mrb[56].mxu1 %v3362_v10  ;;  %v3443_v9 = vld [vmem:[%s3865_s30 + $0x3c4] ss:$8 sps:$4 sm:$0xff]  }
 0x107   : > { %2839 = vmatprep.mubr.msk.bf16.mxu0 %vm1035_vm0, %v3363_v11  ;;  %2871 = vmatprep.mubr.msk.bf16.mxu1 %vm1035_vm0, %v3365_v12 }
 0x10e   : > { %1388 = vmatmul.mubr.bf16.gmra.mrb[60].mxu0 %v3367_v13  ;;  %1644 = vmatmul.mubr.bf16.gmra.mrb[60].mxu1 %v3368_v14 }
 0x10f   : > { %2840 = vmatprep.mubr.msk.bf16.mxu0 %vm1035_vm0, %v3369_v15  ;;  %2872 = vmatprep.mubr.msk.bf16.mxu1 %vm1035_vm0, %v3371_v16 }
 0x116   : > { %1396 = vmatmul.mubr.bf16.gmra.mrb[64].mxu0 %v3373_v17  ;;  %1652 = vmatmul.mubr.bf16.gmra.mrb[64].mxu1 %v3374_v18 }
 0x117   : > { %2841 = vmatprep.mubr.msk.bf16.mxu0 %vm1035_vm0, %v3375_v19  ;;  %2873 = vmatprep.mubr.msk.bf16.mxu1 %vm1035_vm0, %v3377_v20 }
 0x11e   : > { %1404 = vmatmul.mubr.bf16.gmra.mrb[68].mxu0 %v3379_v21  ;;  %1660 = vmatmul.mubr.bf16.gmra.mrb[68].mxu1 %v3380_v22 }
 0x11f   : > { %2842 = vmatprep.mubr.msk.bf16.mxu0 %vm1035_vm0, %v3381_v23  ;;  %2874 = vmatprep.mubr.msk.bf16.mxu1 %vm1035_vm0, %v3383_v24 }
 0x126   : > { %1412 = vmatmul.mubr.bf16.gmra.mrb[72].mxu0 %v3385_v25  ;;  %1668 = vmatmul.mubr.bf16.gmra.mrb[72].mxu1 %v3386_v26 }
 0x127   : > { %2843 = vmatprep.mubr.msk.bf16.mxu0 %vm1035_vm0, %v3387_v27  ;;  %2875 = vmatprep.mubr.msk.bf16.mxu1 %vm1035_vm0, %v3389_v28  ;;  %v3445_v28 = vld [vmem:[%s3865_s30 + $0x1c0] ss:$8 sps:$4 sm:$0xff]  }
 0x12e   : > { %1420 = vmatmul.mubr.bf16.gmra.mrb[76].mxu0 %v3391_v29  ;;  %1676 = vmatmul.mubr.bf16.gmra.mrb[76].mxu1 %v3392_v30  ;;  %v3446_v29 = vld [vmem:[%s3865_s30 + $0x3c0] ss:$8 sps:$4 sm:$0xff]  }
 0x12f   : > { %2844 = vmatprep.mubr.msk.bf16.mxu0 %vm1035_vm0, %v3393_v31  ;;  %2876 = vmatprep.mubr.msk.bf16.mxu1 %vm1035_vm0, %v3395_v32  ;;  %v3447_v32 = vld [vmem:[%s3865_s30 + $0x1d4] ss:$8 sps:$4 sm:$0xff]  }
 0x136   : > { %1428 = vmatmul.mubr.bf16.gmra.mrb[80].mxu0 %v3397_v33  ;;  %1684 = vmatmul.mubr.bf16.gmra.mrb[80].mxu1 %v3398_v34  ;;  %v3449_v33 = vld [vmem:[%s3865_s30 + $0x3d4] ss:$8 sps:$4 sm:$0xff]  }
 0x137   : > { %2845 = vmatprep.mubr.msk.bf16.mxu0 %vm1035_vm0, %v3399_v35  ;;  %2877 = vmatprep.mubr.msk.bf16.mxu1 %vm1035_vm0, %v3401_v36 }
 0x13e   : > { %1436 = vmatmul.mubr.bf16.gmra.mrb[84].mxu0 %v3403_v37  ;;  %1692 = vmatmul.mubr.bf16.gmra.mrb[84].mxu1 %v3404_v38 }
 0x13f   : > { %2846 = vmatprep.mubr.msk.bf16.mxu0 %vm1035_vm0, %v3405_v39  ;;  %2878 = vmatprep.mubr.msk.bf16.mxu1 %vm1035_vm0, %v3407_v40 }
 0x146   : > { %1444 = vmatmul.mubr.bf16.gmra.mrb[88].mxu0 %v3409_v41  ;;  %1700 = vmatmul.mubr.bf16.gmra.mrb[88].mxu1 %v3410_v42 }
 0x147   : > { %2847 = vmatprep.mubr.msk.bf16.mxu0 %vm1035_vm0, %v3411_v43  ;;  %2879 = vmatprep.mubr.msk.bf16.mxu1 %vm1035_vm0, %v3413_v44 }
 0x14e   : > { %1452 = vmatmul.mubr.bf16.gmra.mrb[92].mxu0 %v3415_v45  ;;  %1708 = vmatmul.mubr.bf16.gmra.mrb[92].mxu1 %v3416_v46 }
 0x14f   : > { %2848 = vmatprep.mubr.msk.bf16.mxu0 %vm1035_vm0, %v3417_v47  ;;  %2880 = vmatprep.mubr.msk.bf16.mxu1 %vm1035_vm0, %v3419_v48 }
 0x156   : > { %1460 = vmatmul.mubr.bf16.gmra.mrb[96].mxu0 %v3421_v49  ;;  %1716 = vmatmul.mubr.bf16.gmra.mrb[96].mxu1 %v3422_v50 }
 0x157   : > { %2849 = vmatprep.mubr.msk.bf16.mxu0 %vm1035_vm0, %v3423_v51  ;;  %2881 = vmatprep.mubr.msk.bf16.mxu1 %vm1035_vm0, %v3425_v52  ;;  %v3451_v52 = vld [vmem:[%s3865_s30 + $0x1d0] ss:$8 sps:$4 sm:$0xff]  }
 0x15e   : > { %1468 = vmatmul.mubr.bf16.gmra.mrb[100].mxu0 %v3427_v53  ;;  %1724 = vmatmul.mubr.bf16.gmra.mrb[100].mxu1 %v3428_v54  ;;  %v3452_v53 = vld [vmem:[%s3865_s30 + $0x3d0] ss:$8 sps:$4 sm:$0xff]  }
 0x15f   : > { %2850 = vmatprep.mubr.msk.bf16.mxu0 %vm1035_vm0, %v3429_v55  ;;  %2882 = vmatprep.mubr.msk.bf16.mxu1 %vm1035_vm0, %v3431_v56  ;;  %v3453_v56 = vld [vmem:[%s3865_s30 + $0x1e4] ss:$8 sps:$4 sm:$0xff]  }
 0x166   : > { %1476 = vmatmul.mubr.bf16.gmra.mrb[104].mxu0 %v3433_v57  ;;  %1732 = vmatmul.mubr.bf16.gmra.mrb[104].mxu1 %v3434_v58  ;;  %v3455_v57 = vld [vmem:[%s3865_s30 + $0x3e4] ss:$8 sps:$4 sm:$0xff]  }
 0x167   : > { %2851 = vmatprep.mubr.msk.bf16.mxu0 %vm1035_vm0, %v3435_v59  ;;  %2883 = vmatprep.mubr.msk.bf16.mxu1 %vm1035_vm0, %v3437_v60 }
 0x169   : > { %v1269_v62 = vpop.f32.mrb[0].mxu0  ;;  %v1525_v63 = vpop.f32.mrb[0].mxu1 }
 0x16a   : > { %v1270_v0 = vadd.f32 %v4039_v61, %v1269_v62  ;;  %v1526_v1 = vadd.f32 %v4039_v61, %v1525_v63  ;;  %v1271_v2 = vpop.f32.mrb[1].mxu0  ;;  %v1527_v3 = vpop.f32.mrb[1].mxu1 }
 0x16b   : > { %v1272_v6 = vpop.f32.mrb[2].mxu0  ;;  %v1528_v7 = vpop.f32.mrb[2].mxu1 }
 0x16c   : > { %v1780_v10 = vmax.f32 %v1270_v0, 0.0  ;;  %v1844_v11 = vmax.f32 %v1526_v1, 0.0  ;;  %v1273_v12 = vadd.f32 %v4039_v61, %v1272_v6  ;;  %v1529_v13 = vadd.f32 %v4039_v61, %v1528_v7  ;;  %v1274_v14 = vpop.f32.mrb[3].mxu0  ;;  %v1530_v15 = vpop.f32.mrb[3].mxu1 }
 0x16d   : > { %v3458_v14 = vld [vmem:[%s3865_s30 + $0x3e0] ss:$8 sps:$4 sm:$0xff]  }
 0x16e   : > { %v3023_v16 = vpack.c.bf16 %v1780_v10, %v1780_v10  ;;  %v3087_v17 = vpack.c.bf16 %v1844_v11, %v1844_v11  ;;  %v1781_v18 = vmax.f32 %v1273_v12, 0.0  ;;  %v1845_v19 = vmax.f32 %v1529_v13, 0.0  ;;  %1484 = vmatmul.mubr.bf16.gmra.mrb[108].mxu0 %v3439_v4  ;;  %1740 = vmatmul.mubr.bf16.gmra.mrb[108].mxu1 %v3440_v5  ;;  %v3457_v13 = vld [vmem:[%s3865_s30 + $0x1e0] ss:$8 sps:$4 sm:$0xff]  }
 0x16f   : > { %2852 = vmatprep.mubr.msk.bf16.mxu0 %vm1035_vm0, %v3441_v8  ;;  %2884 = vmatprep.mubr.msk.bf16.mxu1 %vm1035_vm0, %v3443_v9 }
 0x170   : > { %2421 = vst.msk [vmem:[%s4054_s22] sm:$0xf] %vm2420_vm3, %v3023_v16  ;;  %2485 = vst.msk [vmem:[%s4054_s22 + $0x100] sm:$0xf] %vm2420_vm3, %v3087_v17  ;;  %v3024_v20 = vpack.c.bf16 %v1781_v18, %v1781_v18  ;;  %v3088_v21 = vpack.c.bf16 %v1845_v19, %v1845_v19  ;;  %v3459_v17 = vld [vmem:[%s3865_s30 + $0x1f4] ss:$8 sps:$4 sm:$0xff]  }
 0x171   : > { %v1277_v22 = vpop.f32.mrb[4].mxu0  ;;  %v1533_v23 = vpop.f32.mrb[4].mxu1  ;;  %v3461_v18 = vld [vmem:[%s3865_s30 + $0x3f4] ss:$8 sps:$4 sm:$0xff]  }
 0x172   : > { %2422 = vst.msk [vmem:[%s4054_s22 + $0x4] sm:$0xf] %vm2420_vm3, %v3024_v20  ;;  %2486 = vst.msk [vmem:[%s4054_s22 + $0x104] sm:$0xf] %vm2420_vm3, %v3088_v21  ;;  %v1278_v24 = vadd.f32 %v4039_v61, %v1277_v22  ;;  %v1534_v25 = vadd.f32 %v4039_v61, %v1533_v23  ;;  %v1279_v26 = vpop.f32.mrb[5].mxu0  ;;  %v1535_v27 = vpop.f32.mrb[5].mxu1 }
 0x173   : > { %v1280_v30 = vpop.f32.mrb[6].mxu0  ;;  %v1536_v31 = vpop.f32.mrb[6].mxu1 }
 0x174   : > { %v1782_v34 = vmax.f32 %v1278_v24, 0.0  ;;  %v1846_v35 = vmax.f32 %v1534_v25, 0.0  ;;  %v1281_v36 = vadd.f32 %v4039_v61, %v1280_v30  ;;  %v1537_v37 = vadd.f32 %v4039_v61, %v1536_v31  ;;  %v1282_v38 = vpop.f32.mrb[7].mxu0  ;;  %v1538_v39 = vpop.f32.mrb[7].mxu1 }
 0x175   : > { %v3464_v38 = vld [vmem:[%s3865_s30 + $0x3f0] ss:$8 sps:$4 sm:$0xff]  }
 0x176   : > { %v3025_v40 = vpack.c.bf16 %v1782_v34, %v1782_v34  ;;  %v3089_v41 = vpack.c.bf16 %v1846_v35, %v1846_v35  ;;  %v1783_v42 = vmax.f32 %v1281_v36, 0.0  ;;  %v1847_v43 = vmax.f32 %v1537_v37, 0.0  ;;  %1492 = vmatmul.mubr.bf16.gmra.mrb[112].mxu0 %v3445_v28  ;;  %1748 = vmatmul.mubr.bf16.gmra.mrb[112].mxu1 %v3446_v29  ;;  %v3463_v37 = vld [vmem:[%s3865_s30 + $0x1f0] ss:$8 sps:$4 sm:$0xff]  }
 0x177   : > { %2853 = vmatprep.mubr.msk.bf16.mxu0 %vm1035_vm0, %v3447_v32  ;;  %2885 = vmatprep.mubr.msk.bf16.mxu1 %vm1035_vm0, %v3449_v33 }
 0x178   : > { %2423 = vst.msk [vmem:[%s4054_s22 + $0x8] sm:$0xf] %vm2420_vm3, %v3025_v40  ;;  %2487 = vst.msk [vmem:[%s4054_s22 + $0x108] sm:$0xf] %vm2420_vm3, %v3089_v41  ;;  %v3026_v44 = vpack.c.bf16 %v1783_v42, %v1783_v42  ;;  %v3090_v45 = vpack.c.bf16 %v1847_v43, %v1847_v43 }
 0x179   : > { %v1285_v46 = vpop.f32.mrb[8].mxu0  ;;  %v1541_v47 = vpop.f32.mrb[8].mxu1 }
 0x17a   : > { %2424 = vst.msk [vmem:[%s4054_s22 + $0xc] sm:$0xf] %vm2420_vm3, %v3026_v44  ;;  %2488 = vst.msk [vmem:[%s4054_s22 + $0x10c] sm:$0xf] %vm2420_vm3, %v3090_v45  ;;  %v1286_v48 = vadd.f32 %v4039_v61, %v1285_v46  ;;  %v1542_v49 = vadd.f32 %v4039_v61, %v1541_v47  ;;  %v1287_v50 = vpop.f32.mrb[9].mxu0  ;;  %v1543_v51 = vpop.f32.mrb[9].mxu1 }
 0x17b   : > { %v1288_v54 = vpop.f32.mrb[10].mxu0  ;;  %v1544_v55 = vpop.f32.mrb[10].mxu1 }
 0x17c   : > { %v1784_v58 = vmax.f32 %v1286_v48, 0.0  ;;  %v1848_v59 = vmax.f32 %v1542_v49, 0.0  ;;  %v1289_v60 = vadd.f32 %v4039_v61, %v1288_v54  ;;  %v1545_v62 = vadd.f32 %v4039_v61, %v1544_v55  ;;  %v1290_v63 = vpop.f32.mrb[11].mxu0  ;;  %v1546_v0 = vpop.f32.mrb[11].mxu1 }
 0x17e   : > { %v3027_v1 = vpack.c.bf16 %v1784_v58, %v1784_v58  ;;  %v3091_v2 = vpack.c.bf16 %v1848_v59, %v1848_v59  ;;  %v1785_v3 = vmax.f32 %v1289_v60, 0.0  ;;  %v1849_v4 = vmax.f32 %v1545_v62, 0.0  ;;  %1500 = vmatmul.mubr.bf16.gmra.mrb[116].mxu0 %v3451_v52  ;;  %1756 = vmatmul.mubr.bf16.gmra.mrb[116].mxu1 %v3452_v53 }
 0x17f   : > { %2854 = vmatprep.mubr.msk.bf16.mxu0 %vm1035_vm0, %v3453_v56  ;;  %2886 = vmatprep.mubr.msk.bf16.mxu1 %vm1035_vm0, %v3455_v57 }
 0x180   : > { %2425 = vst.msk [vmem:[%s4054_s22 + $0x10] sm:$0xf] %vm2420_vm3, %v3027_v1  ;;  %2489 = vst.msk [vmem:[%s4054_s22 + $0x110] sm:$0xf] %vm2420_vm3, %v3091_v2  ;;  %v3028_v5 = vpack.c.bf16 %v1785_v3, %v1785_v3  ;;  %v3092_v6 = vpack.c.bf16 %v1849_v4, %v1849_v4 }
 0x181   : > { %v1293_v7 = vpop.f32.mrb[12].mxu0  ;;  %v1549_v8 = vpop.f32.mrb[12].mxu1 }
 0x182   : > { %2426 = vst.msk [vmem:[%s4054_s22 + $0x14] sm:$0xf] %vm2420_vm3, %v3028_v5  ;;  %2490 = vst.msk [vmem:[%s4054_s22 + $0x114] sm:$0xf] %vm2420_vm3, %v3092_v6  ;;  %v1294_v9 = vadd.f32 %v4039_v61, %v1293_v7  ;;  %v1550_v10 = vadd.f32 %v4039_v61, %v1549_v8  ;;  %v1295_v11 = vpop.f32.mrb[13].mxu0  ;;  %v1551_v12 = vpop.f32.mrb[13].mxu1 }
 0x183   : > { %v1296_v15 = vpop.f32.mrb[14].mxu0  ;;  %v1552_v16 = vpop.f32.mrb[14].mxu1 }
 0x184   : > { %v1786_v19 = vmax.f32 %v1294_v9, 0.0  ;;  %v1850_v20 = vmax.f32 %v1550_v10, 0.0  ;;  %v1297_v21 = vadd.f32 %v4039_v61, %v1296_v15  ;;  %v1553_v22 = vadd.f32 %v4039_v61, %v1552_v16  ;;  %v1298_v23 = vpop.f32.mrb[15].mxu0  ;;  %v1554_v24 = vpop.f32.mrb[15].mxu1 }
 0x186   : > { %v3029_v25 = vpack.c.bf16 %v1786_v19, %v1786_v19  ;;  %v3093_v26 = vpack.c.bf16 %v1850_v20, %v1850_v20  ;;  %v1787_v27 = vmax.f32 %v1297_v21, 0.0  ;;  %v1851_v28 = vmax.f32 %v1553_v22, 0.0  ;;  %1508 = vmatmul.mubr.bf16.gmra.mrb[120].mxu0 %v3457_v13  ;;  %1764 = vmatmul.mubr.bf16.gmra.mrb[120].mxu1 %v3458_v14 }
 0x187   : > { %2855 = vmatprep.mubr.msk.bf16.mxu0 %vm1035_vm0, %v3459_v17  ;;  %2887 = vmatprep.mubr.msk.bf16.mxu1 %vm1035_vm0, %v3461_v18 }
 0x188   : > { %2427 = vst.msk [vmem:[%s4054_s22 + $0x18] sm:$0xf] %vm2420_vm3, %v3029_v25  ;;  %2491 = vst.msk [vmem:[%s4054_s22 + $0x118] sm:$0xf] %vm2420_vm3, %v3093_v26  ;;  %v3030_v29 = vpack.c.bf16 %v1787_v27, %v1787_v27  ;;  %v3094_v30 = vpack.c.bf16 %v1851_v28, %v1851_v28 }
 0x189   : > { %v1301_v31 = vpop.f32.mrb[16].mxu0  ;;  %v1557_v32 = vpop.f32.mrb[16].mxu1 }
 0x18a   : > { %2428 = vst.msk [vmem:[%s4054_s22 + $0x1c] sm:$0xf] %vm2420_vm3, %v3030_v29  ;;  %2492 = vst.msk [vmem:[%s4054_s22 + $0x11c] sm:$0xf] %vm2420_vm3, %v3094_v30  ;;  %v1302_v33 = vadd.f32 %v4039_v61, %v1301_v31  ;;  %v1558_v34 = vadd.f32 %v4039_v61, %v1557_v32  ;;  %v1303_v35 = vpop.f32.mrb[17].mxu0  ;;  %v1559_v36 = vpop.f32.mrb[17].mxu1 }
 0x18b   : > { %v1304_v39 = vpop.f32.mrb[18].mxu0  ;;  %v1560_v40 = vpop.f32.mrb[18].mxu1 }
 0x18c   : > { %v1788_v41 = vmax.f32 %v1302_v33, 0.0  ;;  %v1852_v42 = vmax.f32 %v1558_v34, 0.0  ;;  %v1305_v43 = vadd.f32 %v4039_v61, %v1304_v39  ;;  %v1561_v44 = vadd.f32 %v4039_v61, %v1560_v40  ;;  %v1306_v45 = vpop.f32.mrb[19].mxu0  ;;  %v1562_v46 = vpop.f32.mrb[19].mxu1 }
 0x18e   : > { %v3031_v47 = vpack.c.bf16 %v1788_v41, %v1788_v41  ;;  %v3095_v48 = vpack.c.bf16 %v1852_v42, %v1852_v42  ;;  %v1789_v49 = vmax.f32 %v1305_v43, 0.0  ;;  %v1853_v50 = vmax.f32 %v1561_v44, 0.0  ;;  %1516 = vmatmul.mubr.bf16.gmra.mrb[124].mxu0 %v3463_v37  ;;  %1772 = vmatmul.mubr.bf16.gmra.mrb[124].mxu1 %v3464_v38 }
 0x190   : > { %2429 = vst.msk [vmem:[%s4054_s22 + $0x20] sm:$0xf] %vm2420_vm3, %v3031_v47  ;;  %2493 = vst.msk [vmem:[%s4054_s22 + $0x120] sm:$0xf] %vm2420_vm3, %v3095_v48  ;;  %v3032_v51 = vpack.c.bf16 %v1789_v49, %v1789_v49  ;;  %v3096_v52 = vpack.c.bf16 %v1853_v50, %v1853_v50 }
 0x191   : > { %v1309_v53 = vpop.f32.mrb[20].mxu0  ;;  %v1565_v54 = vpop.f32.mrb[20].mxu1 }
 0x192   : > { %2430 = vst.msk [vmem:[%s4054_s22 + $0x24] sm:$0xf] %vm2420_vm3, %v3032_v51  ;;  %2494 = vst.msk [vmem:[%s4054_s22 + $0x124] sm:$0xf] %vm2420_vm3, %v3096_v52  ;;  %v1310_v55 = vadd.f32 %v4039_v61, %v1309_v53  ;;  %v1566_v56 = vadd.f32 %v4039_v61, %v1565_v54  ;;  %v1311_v57 = vpop.f32.mrb[21].mxu0  ;;  %v1567_v58 = vpop.f32.mrb[21].mxu1 }
 0x193   : > { %v1312_v59 = vpop.f32.mrb[22].mxu0  ;;  %v1568_v60 = vpop.f32.mrb[22].mxu1 }
 0x194   : > { %v1790_v62 = vmax.f32 %v1310_v55, 0.0  ;;  %v1854_v63 = vmax.f32 %v1566_v56, 0.0  ;;  %v1313_v0 = vadd.f32 %v4039_v61, %v1312_v59  ;;  %v1569_v1 = vadd.f32 %v4039_v61, %v1568_v60  ;;  %v1314_v2 = vpop.f32.mrb[23].mxu0  ;;  %v1570_v3 = vpop.f32.mrb[23].mxu1 }
 0x196   : > { %v3033_v4 = vpack.c.bf16 %v1790_v62, %v1790_v62  ;;  %v3097_v5 = vpack.c.bf16 %v1854_v63, %v1854_v63  ;;  %v1791_v6 = vmax.f32 %v1313_v0, 0.0  ;;  %v1855_v7 = vmax.f32 %v1569_v1, 0.0 }
 0x198   : > { %2431 = vst.msk [vmem:[%s4054_s22 + $0x28] sm:$0xf] %vm2420_vm3, %v3033_v4  ;;  %2495 = vst.msk [vmem:[%s4054_s22 + $0x128] sm:$0xf] %vm2420_vm3, %v3097_v5  ;;  %v3034_v8 = vpack.c.bf16 %v1791_v6, %v1791_v6  ;;  %v3098_v9 = vpack.c.bf16 %v1855_v7, %v1855_v7 }
 0x199   : > { %v1317_v10 = vpop.f32.mrb[24].mxu0  ;;  %v1573_v11 = vpop.f32.mrb[24].mxu1 }
 0x19a   : > { %2432 = vst.msk [vmem:[%s4054_s22 + $0x2c] sm:$0xf] %vm2420_vm3, %v3034_v8  ;;  %2496 = vst.msk [vmem:[%s4054_s22 + $0x12c] sm:$0xf] %vm2420_vm3, %v3098_v9  ;;  %v1318_v12 = vadd.f32 %v4039_v61, %v1317_v10  ;;  %v1574_v13 = vadd.f32 %v4039_v61, %v1573_v11  ;;  %v1319_v14 = vpop.f32.mrb[25].mxu0  ;;  %v1575_v15 = vpop.f32.mrb[25].mxu1 }
 0x19b   : > { %v1320_v16 = vpop.f32.mrb[26].mxu0  ;;  %v1576_v17 = vpop.f32.mrb[26].mxu1 }
 0x19c   : > { %v1792_v18 = vmax.f32 %v1318_v12, 0.0  ;;  %v1856_v19 = vmax.f32 %v1574_v13, 0.0  ;;  %v1321_v20 = vadd.f32 %v4039_v61, %v1320_v16  ;;  %v1577_v21 = vadd.f32 %v4039_v61, %v1576_v17  ;;  %v1322_v22 = vpop.f32.mrb[27].mxu0  ;;  %v1578_v23 = vpop.f32.mrb[27].mxu1 }
 0x19e   : > { %v3035_v24 = vpack.c.bf16 %v1792_v18, %v1792_v18  ;;  %v3099_v25 = vpack.c.bf16 %v1856_v19, %v1856_v19  ;;  %v1793_v26 = vmax.f32 %v1321_v20, 0.0  ;;  %v1857_v27 = vmax.f32 %v1577_v21, 0.0 }
 0x1a0   : > { %2433 = vst.msk [vmem:[%s4054_s22 + $0x30] sm:$0xf] %vm2420_vm3, %v3035_v24  ;;  %2497 = vst.msk [vmem:[%s4054_s22 + $0x130] sm:$0xf] %vm2420_vm3, %v3099_v25  ;;  %v3036_v28 = vpack.c.bf16 %v1793_v26, %v1793_v26  ;;  %v3100_v29 = vpack.c.bf16 %v1857_v27, %v1857_v27 }
 0x1a1   : > { %v1325_v30 = vpop.f32.mrb[28].mxu0  ;;  %v1581_v31 = vpop.f32.mrb[28].mxu1 }
 0x1a2   : > { %2434 = vst.msk [vmem:[%s4054_s22 + $0x34] sm:$0xf] %vm2420_vm3, %v3036_v28  ;;  %2498 = vst.msk [vmem:[%s4054_s22 + $0x134] sm:$0xf] %vm2420_vm3, %v3100_v29  ;;  %v1326_v32 = vadd.f32 %v4039_v61, %v1325_v30  ;;  %v1582_v33 = vadd.f32 %v4039_v61, %v1581_v31  ;;  %v1327_v34 = vpop.f32.mrb[29].mxu0  ;;  %v1583_v35 = vpop.f32.mrb[29].mxu1 }
 0x1a3   : > { %v1328_v36 = vpop.f32.mrb[30].mxu0  ;;  %v1584_v37 = vpop.f32.mrb[30].mxu1 }
 0x1a4   : > { %v1794_v38 = vmax.f32 %v1326_v32, 0.0  ;;  %v1858_v39 = vmax.f32 %v1582_v33, 0.0  ;;  %v1329_v40 = vadd.f32 %v4039_v61, %v1328_v36  ;;  %v1585_v41 = vadd.f32 %v4039_v61, %v1584_v37  ;;  %v1330_v42 = vpop.f32.mrb[31].mxu0  ;;  %v1586_v43 = vpop.f32.mrb[31].mxu1 }
 0x1a6   : > { %v3037_v44 = vpack.c.bf16 %v1794_v38, %v1794_v38  ;;  %v3101_v45 = vpack.c.bf16 %v1858_v39, %v1858_v39  ;;  %v1795_v46 = vmax.f32 %v1329_v40, 0.0  ;;  %v1859_v47 = vmax.f32 %v1585_v41, 0.0 }
 0x1a8   : > { %2435 = vst.msk [vmem:[%s4054_s22 + $0x38] sm:$0xf] %vm2420_vm3, %v3037_v44  ;;  %2499 = vst.msk [vmem:[%s4054_s22 + $0x138] sm:$0xf] %vm2420_vm3, %v3101_v45  ;;  %v3038_v48 = vpack.c.bf16 %v1795_v46, %v1795_v46  ;;  %v3102_v49 = vpack.c.bf16 %v1859_v47, %v1859_v47 }
 0x1a9   : > { %v1333_v50 = vpop.f32.mrb[32].mxu0  ;;  %v1589_v51 = vpop.f32.mrb[32].mxu1 }
 0x1aa   : > { %2436 = vst.msk [vmem:[%s4054_s22 + $0x3c] sm:$0xf] %vm2420_vm3, %v3038_v48  ;;  %2500 = vst.msk [vmem:[%s4054_s22 + $0x13c] sm:$0xf] %vm2420_vm3, %v3102_v49  ;;  %v1334_v52 = vadd.f32 %v4039_v61, %v1333_v50  ;;  %v1590_v53 = vadd.f32 %v4039_v61, %v1589_v51  ;;  %v1335_v54 = vpop.f32.mrb[33].mxu0  ;;  %v1591_v55 = vpop.f32.mrb[33].mxu1 }
 0x1ab   : > { %v1336_v56 = vpop.f32.mrb[34].mxu0  ;;  %v1592_v57 = vpop.f32.mrb[34].mxu1 }
 0x1ac   : > { %v1796_v58 = vmax.f32 %v1334_v52, 0.0  ;;  %v1860_v59 = vmax.f32 %v1590_v53, 0.0  ;;  %v1337_v60 = vadd.f32 %v4039_v61, %v1336_v56  ;;  %v1593_v62 = vadd.f32 %v4039_v61, %v1592_v57  ;;  %v1338_v63 = vpop.f32.mrb[35].mxu0  ;;  %v1594_v0 = vpop.f32.mrb[35].mxu1 }
 0x1ae   : > { %v3039_v1 = vpack.c.bf16 %v1796_v58, %v1796_v58  ;;  %v3103_v2 = vpack.c.bf16 %v1860_v59, %v1860_v59  ;;  %v1797_v3 = vmax.f32 %v1337_v60, 0.0  ;;  %v1861_v4 = vmax.f32 %v1593_v62, 0.0 }
 0x1b0   : > { %2437 = vst.msk [vmem:[%s4054_s22 + $0x40] sm:$0xf] %vm2420_vm3, %v3039_v1  ;;  %2501 = vst.msk [vmem:[%s4054_s22 + $0x140] sm:$0xf] %vm2420_vm3, %v3103_v2  ;;  %v3040_v5 = vpack.c.bf16 %v1797_v3, %v1797_v3  ;;  %v3104_v6 = vpack.c.bf16 %v1861_v4, %v1861_v4 }
 0x1b1   : > { %v1341_v7 = vpop.f32.mrb[36].mxu0  ;;  %v1597_v8 = vpop.f32.mrb[36].mxu1 }
 0x1b2   : > { %2438 = vst.msk [vmem:[%s4054_s22 + $0x44] sm:$0xf] %vm2420_vm3, %v3040_v5  ;;  %2502 = vst.msk [vmem:[%s4054_s22 + $0x144] sm:$0xf] %vm2420_vm3, %v3104_v6  ;;  %v1342_v9 = vadd.f32 %v4039_v61, %v1341_v7  ;;  %v1598_v10 = vadd.f32 %v4039_v61, %v1597_v8  ;;  %v1343_v11 = vpop.f32.mrb[37].mxu0  ;;  %v1599_v12 = vpop.f32.mrb[37].mxu1 }
 0x1b3   : > { %v1344_v13 = vpop.f32.mrb[38].mxu0  ;;  %v1600_v14 = vpop.f32.mrb[38].mxu1 }
 0x1b4   : > { %v1798_v15 = vmax.f32 %v1342_v9, 0.0  ;;  %v1862_v16 = vmax.f32 %v1598_v10, 0.0  ;;  %v1345_v17 = vadd.f32 %v4039_v61, %v1344_v13  ;;  %v1601_v18 = vadd.f32 %v4039_v61, %v1600_v14  ;;  %v1346_v19 = vpop.f32.mrb[39].mxu0  ;;  %v1602_v20 = vpop.f32.mrb[39].mxu1 }
 0x1b6   : > { %v3041_v21 = vpack.c.bf16 %v1798_v15, %v1798_v15  ;;  %v3105_v22 = vpack.c.bf16 %v1862_v16, %v1862_v16  ;;  %v1799_v23 = vmax.f32 %v1345_v17, 0.0  ;;  %v1863_v24 = vmax.f32 %v1601_v18, 0.0 }
 0x1b8   : > { %2439 = vst.msk [vmem:[%s4054_s22 + $0x48] sm:$0xf] %vm2420_vm3, %v3041_v21  ;;  %2503 = vst.msk [vmem:[%s4054_s22 + $0x148] sm:$0xf] %vm2420_vm3, %v3105_v22  ;;  %v3042_v25 = vpack.c.bf16 %v1799_v23, %v1799_v23  ;;  %v3106_v26 = vpack.c.bf16 %v1863_v24, %v1863_v24 }
 0x1b9   : > { %v1349_v27 = vpop.f32.mrb[40].mxu0  ;;  %v1605_v28 = vpop.f32.mrb[40].mxu1 }
 0x1ba   : > { %2440 = vst.msk [vmem:[%s4054_s22 + $0x4c] sm:$0xf] %vm2420_vm3, %v3042_v25  ;;  %2504 = vst.msk [vmem:[%s4054_s22 + $0x14c] sm:$0xf] %vm2420_vm3, %v3106_v26  ;;  %v1350_v29 = vadd.f32 %v4039_v61, %v1349_v27  ;;  %v1606_v30 = vadd.f32 %v4039_v61, %v1605_v28  ;;  %v1351_v31 = vpop.f32.mrb[41].mxu0  ;;  %v1607_v32 = vpop.f32.mrb[41].mxu1 }
 0x1bb   : > { %v1352_v33 = vpop.f32.mrb[42].mxu0  ;;  %v1608_v34 = vpop.f32.mrb[42].mxu1 }
 0x1bc   : > { %v1800_v35 = vmax.f32 %v1350_v29, 0.0  ;;  %v1864_v36 = vmax.f32 %v1606_v30, 0.0  ;;  %v1353_v37 = vadd.f32 %v4039_v61, %v1352_v33  ;;  %v1609_v38 = vadd.f32 %v4039_v61, %v1608_v34  ;;  %v1354_v39 = vpop.f32.mrb[43].mxu0  ;;  %v1610_v40 = vpop.f32.mrb[43].mxu1 }
 0x1be   : > { %v3043_v41 = vpack.c.bf16 %v1800_v35, %v1800_v35  ;;  %v3107_v42 = vpack.c.bf16 %v1864_v36, %v1864_v36  ;;  %v1801_v43 = vmax.f32 %v1353_v37, 0.0  ;;  %v1865_v44 = vmax.f32 %v1609_v38, 0.0 }
 0x1c0   : > { %2441 = vst.msk [vmem:[%s4054_s22 + $0x50] sm:$0xf] %vm2420_vm3, %v3043_v41  ;;  %2505 = vst.msk [vmem:[%s4054_s22 + $0x150] sm:$0xf] %vm2420_vm3, %v3107_v42  ;;  %v3044_v45 = vpack.c.bf16 %v1801_v43, %v1801_v43  ;;  %v3108_v46 = vpack.c.bf16 %v1865_v44, %v1865_v44 }
 0x1c1   : > { %v1357_v47 = vpop.f32.mrb[44].mxu0  ;;  %v1613_v48 = vpop.f32.mrb[44].mxu1 }
 0x1c2   : > { %2442 = vst.msk [vmem:[%s4054_s22 + $0x54] sm:$0xf] %vm2420_vm3, %v3044_v45  ;;  %2506 = vst.msk [vmem:[%s4054_s22 + $0x154] sm:$0xf] %vm2420_vm3, %v3108_v46  ;;  %v1358_v49 = vadd.f32 %v4039_v61, %v1357_v47  ;;  %v1614_v50 = vadd.f32 %v4039_v61, %v1613_v48  ;;  %v1359_v51 = vpop.f32.mrb[45].mxu0  ;;  %v1615_v52 = vpop.f32.mrb[45].mxu1 }
 0x1c3   : > { %v1360_v53 = vpop.f32.mrb[46].mxu0  ;;  %v1616_v54 = vpop.f32.mrb[46].mxu1 }
 0x1c4   : > { %v1802_v55 = vmax.f32 %v1358_v49, 0.0  ;;  %v1866_v56 = vmax.f32 %v1614_v50, 0.0  ;;  %v1361_v57 = vadd.f32 %v4039_v61, %v1360_v53  ;;  %v1617_v58 = vadd.f32 %v4039_v61, %v1616_v54  ;;  %v1362_v59 = vpop.f32.mrb[47].mxu0  ;;  %v1618_v60 = vpop.f32.mrb[47].mxu1 }
 0x1c6   : > { %v3045_v62 = vpack.c.bf16 %v1802_v55, %v1802_v55  ;;  %v3109_v63 = vpack.c.bf16 %v1866_v56, %v1866_v56  ;;  %v1803_v0 = vmax.f32 %v1361_v57, 0.0  ;;  %v1867_v1 = vmax.f32 %v1617_v58, 0.0 }
 0x1c8   : > { %2443 = vst.msk [vmem:[%s4054_s22 + $0x58] sm:$0xf] %vm2420_vm3, %v3045_v62  ;;  %2507 = vst.msk [vmem:[%s4054_s22 + $0x158] sm:$0xf] %vm2420_vm3, %v3109_v63  ;;  %v3046_v2 = vpack.c.bf16 %v1803_v0, %v1803_v0  ;;  %v3110_v3 = vpack.c.bf16 %v1867_v1, %v1867_v1 }
 0x1c9   : > { %v1365_v4 = vpop.f32.mrb[48].mxu0  ;;  %v1621_v5 = vpop.f32.mrb[48].mxu1 }
 0x1ca   : > { %2444 = vst.msk [vmem:[%s4054_s22 + $0x5c] sm:$0xf] %vm2420_vm3, %v3046_v2  ;;  %2508 = vst.msk [vmem:[%s4054_s22 + $0x15c] sm:$0xf] %vm2420_vm3, %v3110_v3  ;;  %v1366_v6 = vadd.f32 %v4039_v61, %v1365_v4  ;;  %v1622_v7 = vadd.f32 %v4039_v61, %v1621_v5  ;;  %v1367_v8 = vpop.f32.mrb[49].mxu0  ;;  %v1623_v9 = vpop.f32.mrb[49].mxu1 }
 0x1cb   : > { %v1368_v10 = vpop.f32.mrb[50].mxu0  ;;  %v1624_v11 = vpop.f32.mrb[50].mxu1 }
 0x1cc   : > { %v1804_v12 = vmax.f32 %v1366_v6, 0.0  ;;  %v1868_v13 = vmax.f32 %v1622_v7, 0.0  ;;  %v1369_v14 = vadd.f32 %v4039_v61, %v1368_v10  ;;  %v1625_v15 = vadd.f32 %v4039_v61, %v1624_v11  ;;  %v1370_v16 = vpop.f32.mrb[51].mxu0  ;;  %v1626_v17 = vpop.f32.mrb[51].mxu1 }
 0x1ce   : > { %v3047_v18 = vpack.c.bf16 %v1804_v12, %v1804_v12  ;;  %v3111_v19 = vpack.c.bf16 %v1868_v13, %v1868_v13  ;;  %v1805_v20 = vmax.f32 %v1369_v14, 0.0  ;;  %v1869_v21 = vmax.f32 %v1625_v15, 0.0 }
 0x1d0   : > { %2445 = vst.msk [vmem:[%s4054_s22 + $0x60] sm:$0xf] %vm2420_vm3, %v3047_v18  ;;  %2509 = vst.msk [vmem:[%s4054_s22 + $0x160] sm:$0xf] %vm2420_vm3, %v3111_v19  ;;  %v3048_v22 = vpack.c.bf16 %v1805_v20, %v1805_v20  ;;  %v3112_v23 = vpack.c.bf16 %v1869_v21, %v1869_v21 }
 0x1d1   : > { %v1373_v24 = vpop.f32.mrb[52].mxu0  ;;  %v1629_v25 = vpop.f32.mrb[52].mxu1 }
 0x1d2   : > { %2446 = vst.msk [vmem:[%s4054_s22 + $0x64] sm:$0xf] %vm2420_vm3, %v3048_v22  ;;  %2510 = vst.msk [vmem:[%s4054_s22 + $0x164] sm:$0xf] %vm2420_vm3, %v3112_v23  ;;  %v1374_v26 = vadd.f32 %v4039_v61, %v1373_v24  ;;  %v1630_v27 = vadd.f32 %v4039_v61, %v1629_v25  ;;  %v1375_v28 = vpop.f32.mrb[53].mxu0  ;;  %v1631_v29 = vpop.f32.mrb[53].mxu1 }
 0x1d3   : > { %v1376_v30 = vpop.f32.mrb[54].mxu0  ;;  %v1632_v31 = vpop.f32.mrb[54].mxu1 }
 0x1d4   : > { %v1806_v32 = vmax.f32 %v1374_v26, 0.0  ;;  %v1870_v33 = vmax.f32 %v1630_v27, 0.0  ;;  %v1377_v34 = vadd.f32 %v4039_v61, %v1376_v30  ;;  %v1633_v35 = vadd.f32 %v4039_v61, %v1632_v31  ;;  %v1378_v36 = vpop.f32.mrb[55].mxu0  ;;  %v1634_v37 = vpop.f32.mrb[55].mxu1 }
 0x1d6   : > { %v3049_v38 = vpack.c.bf16 %v1806_v32, %v1806_v32  ;;  %v3113_v39 = vpack.c.bf16 %v1870_v33, %v1870_v33  ;;  %v1807_v40 = vmax.f32 %v1377_v34, 0.0  ;;  %v1871_v41 = vmax.f32 %v1633_v35, 0.0 }
 0x1d8   : > { %2447 = vst.msk [vmem:[%s4054_s22 + $0x68] sm:$0xf] %vm2420_vm3, %v3049_v38  ;;  %2511 = vst.msk [vmem:[%s4054_s22 + $0x168] sm:$0xf] %vm2420_vm3, %v3113_v39  ;;  %v3050_v42 = vpack.c.bf16 %v1807_v40, %v1807_v40  ;;  %v3114_v43 = vpack.c.bf16 %v1871_v41, %v1871_v41 }
 0x1d9   : > { %v1381_v44 = vpop.f32.mrb[56].mxu0  ;;  %v1637_v45 = vpop.f32.mrb[56].mxu1 }
 0x1da   : > { %2448 = vst.msk [vmem:[%s4054_s22 + $0x6c] sm:$0xf] %vm2420_vm3, %v3050_v42  ;;  %2512 = vst.msk [vmem:[%s4054_s22 + $0x16c] sm:$0xf] %vm2420_vm3, %v3114_v43  ;;  %v1382_v46 = vadd.f32 %v4039_v61, %v1381_v44  ;;  %v1638_v47 = vadd.f32 %v4039_v61, %v1637_v45  ;;  %v1383_v48 = vpop.f32.mrb[57].mxu0  ;;  %v1639_v49 = vpop.f32.mrb[57].mxu1 }
 0x1db   : > { %v1384_v50 = vpop.f32.mrb[58].mxu0  ;;  %v1640_v51 = vpop.f32.mrb[58].mxu1 }
 0x1dc   : > { %v1808_v52 = vmax.f32 %v1382_v46, 0.0  ;;  %v1872_v53 = vmax.f32 %v1638_v47, 0.0  ;;  %v1385_v54 = vadd.f32 %v4039_v61, %v1384_v50  ;;  %v1641_v55 = vadd.f32 %v4039_v61, %v1640_v51  ;;  %v1386_v56 = vpop.f32.mrb[59].mxu0  ;;  %v1642_v57 = vpop.f32.mrb[59].mxu1 }
 0x1de   : > { %v3051_v58 = vpack.c.bf16 %v1808_v52, %v1808_v52  ;;  %v3115_v59 = vpack.c.bf16 %v1872_v53, %v1872_v53  ;;  %v1809_v60 = vmax.f32 %v1385_v54, 0.0  ;;  %v1873_v62 = vmax.f32 %v1641_v55, 0.0 }
 0x1e0   : > { %2449 = vst.msk [vmem:[%s4054_s22 + $0x70] sm:$0xf] %vm2420_vm3, %v3051_v58  ;;  %2513 = vst.msk [vmem:[%s4054_s22 + $0x170] sm:$0xf] %vm2420_vm3, %v3115_v59  ;;  %v3052_v63 = vpack.c.bf16 %v1809_v60, %v1809_v60  ;;  %v3116_v0 = vpack.c.bf16 %v1873_v62, %v1873_v62 }
 0x1e1   : > { %v1389_v1 = vpop.f32.mrb[60].mxu0  ;;  %v1645_v2 = vpop.f32.mrb[60].mxu1 }
 0x1e2   : > { %2450 = vst.msk [vmem:[%s4054_s22 + $0x74] sm:$0xf] %vm2420_vm3, %v3052_v63  ;;  %2514 = vst.msk [vmem:[%s4054_s22 + $0x174] sm:$0xf] %vm2420_vm3, %v3116_v0  ;;  %v1390_v3 = vadd.f32 %v4039_v61, %v1389_v1  ;;  %v1646_v4 = vadd.f32 %v4039_v61, %v1645_v2  ;;  %v1391_v5 = vpop.f32.mrb[61].mxu0  ;;  %v1647_v6 = vpop.f32.mrb[61].mxu1 }
 0x1e3   : > { %v1392_v7 = vpop.f32.mrb[62].mxu0  ;;  %v1648_v8 = vpop.f32.mrb[62].mxu1 }
 0x1e4   : > { %v1810_v9 = vmax.f32 %v1390_v3, 0.0  ;;  %v1874_v10 = vmax.f32 %v1646_v4, 0.0  ;;  %v1393_v11 = vadd.f32 %v4039_v61, %v1392_v7  ;;  %v1649_v12 = vadd.f32 %v4039_v61, %v1648_v8  ;;  %v1394_v13 = vpop.f32.mrb[63].mxu0  ;;  %v1650_v14 = vpop.f32.mrb[63].mxu1 }
 0x1e6   : > { %v3053_v15 = vpack.c.bf16 %v1810_v9, %v1810_v9  ;;  %v3117_v16 = vpack.c.bf16 %v1874_v10, %v1874_v10  ;;  %v1811_v17 = vmax.f32 %v1393_v11, 0.0  ;;  %v1875_v18 = vmax.f32 %v1649_v12, 0.0 }
 0x1e8   : > { %2451 = vst.msk [vmem:[%s4054_s22 + $0x78] sm:$0xf] %vm2420_vm3, %v3053_v15  ;;  %2515 = vst.msk [vmem:[%s4054_s22 + $0x178] sm:$0xf] %vm2420_vm3, %v3117_v16  ;;  %v3054_v19 = vpack.c.bf16 %v1811_v17, %v1811_v17  ;;  %v3118_v20 = vpack.c.bf16 %v1875_v18, %v1875_v18 }
 0x1e9   : > { %v1397_v21 = vpop.f32.mrb[64].mxu0  ;;  %v1653_v22 = vpop.f32.mrb[64].mxu1 }
 0x1ea   : > { %2452 = vst.msk [vmem:[%s4054_s22 + $0x7c] sm:$0xf] %vm2420_vm3, %v3054_v19  ;;  %2516 = vst.msk [vmem:[%s4054_s22 + $0x17c] sm:$0xf] %vm2420_vm3, %v3118_v20  ;;  %v1398_v23 = vadd.f32 %v4039_v61, %v1397_v21  ;;  %v1654_v24 = vadd.f32 %v4039_v61, %v1653_v22  ;;  %v1399_v25 = vpop.f32.mrb[65].mxu0  ;;  %v1655_v26 = vpop.f32.mrb[65].mxu1 }
 0x1eb   : > { %v1400_v27 = vpop.f32.mrb[66].mxu0  ;;  %v1656_v28 = vpop.f32.mrb[66].mxu1 }
 0x1ec   : > { %v1812_v29 = vmax.f32 %v1398_v23, 0.0  ;;  %v1876_v30 = vmax.f32 %v1654_v24, 0.0  ;;  %v1401_v31 = vadd.f32 %v4039_v61, %v1400_v27  ;;  %v1657_v32 = vadd.f32 %v4039_v61, %v1656_v28  ;;  %v1402_v33 = vpop.f32.mrb[67].mxu0  ;;  %v1658_v34 = vpop.f32.mrb[67].mxu1 }
 0x1ee   : > { %v3055_v35 = vpack.c.bf16 %v1812_v29, %v1812_v29  ;;  %v3119_v36 = vpack.c.bf16 %v1876_v30, %v1876_v30  ;;  %v1813_v37 = vmax.f32 %v1401_v31, 0.0  ;;  %v1877_v38 = vmax.f32 %v1657_v32, 0.0 }
 0x1f0   : > { %2453 = vst.msk [vmem:[%s4054_s22 + $0x80] sm:$0xf] %vm2420_vm3, %v3055_v35  ;;  %2517 = vst.msk [vmem:[%s4054_s22 + $0x180] sm:$0xf] %vm2420_vm3, %v3119_v36  ;;  %v3056_v39 = vpack.c.bf16 %v1813_v37, %v1813_v37  ;;  %v3120_v40 = vpack.c.bf16 %v1877_v38, %v1877_v38 }
 0x1f1   : > { %v1405_v41 = vpop.f32.mrb[68].mxu0  ;;  %v1661_v42 = vpop.f32.mrb[68].mxu1 }
 0x1f2   : > { %2454 = vst.msk [vmem:[%s4054_s22 + $0x84] sm:$0xf] %vm2420_vm3, %v3056_v39  ;;  %2518 = vst.msk [vmem:[%s4054_s22 + $0x184] sm:$0xf] %vm2420_vm3, %v3120_v40  ;;  %v1406_v43 = vadd.f32 %v4039_v61, %v1405_v41  ;;  %v1662_v44 = vadd.f32 %v4039_v61, %v1661_v42  ;;  %v1407_v45 = vpop.f32.mrb[69].mxu0  ;;  %v1663_v46 = vpop.f32.mrb[69].mxu1 }
 0x1f3   : > { %v1408_v47 = vpop.f32.mrb[70].mxu0  ;;  %v1664_v48 = vpop.f32.mrb[70].mxu1  ;;  %v4312_v40 = vld [vmem:[#allocation7] ss:$0 sm:$0xff] }
 0x1f4   : > { %v1814_v49 = vmax.f32 %v1406_v43, 0.0  ;;  %v1878_v50 = vmax.f32 %v1662_v44, 0.0  ;;  %v1409_v51 = vadd.f32 %v4039_v61, %v1408_v47  ;;  %v1665_v52 = vadd.f32 %v4039_v61, %v1664_v48  ;;  %v1410_v53 = vpop.f32.mrb[71].mxu0  ;;  %v1666_v54 = vpop.f32.mrb[71].mxu1 }
 0x1f6   : > { %v3057_v55 = vpack.c.bf16 %v1814_v49, %v1814_v49  ;;  %v3121_v56 = vpack.c.bf16 %v1878_v50, %v1878_v50  ;;  %v1815_v57 = vmax.f32 %v1409_v51, 0.0  ;;  %v1879_v58 = vmax.f32 %v1665_v52, 0.0 }
 0x1f8   : > { %2455 = vst.msk [vmem:[%s4054_s22 + $0x88] sm:$0xf] %vm2420_vm3, %v3057_v55  ;;  %2519 = vst.msk [vmem:[%s4054_s22 + $0x188] sm:$0xf] %vm2420_vm3, %v3121_v56  ;;  %v3058_v59 = vpack.c.bf16 %v1815_v57, %v1815_v57  ;;  %v3122_v60 = vpack.c.bf16 %v1879_v58, %v1879_v58 }
 0x1f9   : > { %v1413_v62 = vpop.f32.mrb[72].mxu0  ;;  %v1669_v63 = vpop.f32.mrb[72].mxu1 }
 0x1fa   : > { %2456 = vst.msk [vmem:[%s4054_s22 + $0x8c] sm:$0xf] %vm2420_vm3, %v3058_v59  ;;  %2520 = vst.msk [vmem:[%s4054_s22 + $0x18c] sm:$0xf] %vm2420_vm3, %v3122_v60  ;;  %v1414_v0 = vadd.f32 %v4039_v61, %v1413_v62  ;;  %v1670_v1 = vadd.f32 %v4039_v61, %v1669_v63  ;;  %v1415_v2 = vpop.f32.mrb[73].mxu0  ;;  %v1671_v3 = vpop.f32.mrb[73].mxu1 }
 0x1fb   : > { %v1416_v4 = vpop.f32.mrb[74].mxu0  ;;  %v1672_v5 = vpop.f32.mrb[74].mxu1 }
 0x1fc   : > { %v1816_v6 = vmax.f32 %v1414_v0, 0.0  ;;  %v1880_v7 = vmax.f32 %v1670_v1, 0.0  ;;  %v1417_v8 = vadd.f32 %v4039_v61, %v1416_v4  ;;  %v1673_v9 = vadd.f32 %v4039_v61, %v1672_v5  ;;  %v1418_v10 = vpop.f32.mrb[75].mxu0  ;;  %v1674_v11 = vpop.f32.mrb[75].mxu1 }
 0x1fe   : > { %v3059_v12 = vpack.c.bf16 %v1816_v6, %v1816_v6  ;;  %v3123_v13 = vpack.c.bf16 %v1880_v7, %v1880_v7  ;;  %v1817_v14 = vmax.f32 %v1417_v8, 0.0  ;;  %v1881_v15 = vmax.f32 %v1673_v9, 0.0 }
 0x200   : > { %2457 = vst.msk [vmem:[%s4054_s22 + $0x90] sm:$0xf] %vm2420_vm3, %v3059_v12  ;;  %2521 = vst.msk [vmem:[%s4054_s22 + $0x190] sm:$0xf] %vm2420_vm3, %v3123_v13  ;;  %v3060_v16 = vpack.c.bf16 %v1817_v14, %v1817_v14  ;;  %v3124_v17 = vpack.c.bf16 %v1881_v15, %v1881_v15 }
 0x201   : > { %v1421_v18 = vpop.f32.mrb[76].mxu0  ;;  %v1677_v19 = vpop.f32.mrb[76].mxu1 }
 0x202   : > { %2458 = vst.msk [vmem:[%s4054_s22 + $0x94] sm:$0xf] %vm2420_vm3, %v3060_v16  ;;  %2522 = vst.msk [vmem:[%s4054_s22 + $0x194] sm:$0xf] %vm2420_vm3, %v3124_v17  ;;  %v1422_v20 = vadd.f32 %v4039_v61, %v1421_v18  ;;  %v1678_v21 = vadd.f32 %v4039_v61, %v1677_v19  ;;  %v1423_v22 = vpop.f32.mrb[77].mxu0  ;;  %v1679_v23 = vpop.f32.mrb[77].mxu1 }
 0x203   : > { %v1424_v24 = vpop.f32.mrb[78].mxu0  ;;  %v1680_v25 = vpop.f32.mrb[78].mxu1 }
 0x204   : > { %v1818_v26 = vmax.f32 %v1422_v20, 0.0  ;;  %v1882_v27 = vmax.f32 %v1678_v21, 0.0  ;;  %v1425_v28 = vadd.f32 %v4039_v61, %v1424_v24  ;;  %v1681_v29 = vadd.f32 %v4039_v61, %v1680_v25  ;;  %v1426_v30 = vpop.f32.mrb[79].mxu0  ;;  %v1682_v31 = vpop.f32.mrb[79].mxu1 }
 0x206   : > { %v3061_v32 = vpack.c.bf16 %v1818_v26, %v1818_v26  ;;  %v3125_v33 = vpack.c.bf16 %v1882_v27, %v1882_v27  ;;  %v1819_v34 = vmax.f32 %v1425_v28, 0.0  ;;  %v1883_v35 = vmax.f32 %v1681_v29, 0.0 }
 0x208   : > { %2459 = vst.msk [vmem:[%s4054_s22 + $0x98] sm:$0xf] %vm2420_vm3, %v3061_v32  ;;  %2523 = vst.msk [vmem:[%s4054_s22 + $0x198] sm:$0xf] %vm2420_vm3, %v3125_v33  ;;  %v3062_v36 = vpack.c.bf16 %v1819_v34, %v1819_v34  ;;  %v3126_v37 = vpack.c.bf16 %v1883_v35, %v1883_v35 }
 0x209   : > { %v1429_v38 = vpop.f32.mrb[80].mxu0  ;;  %v1685_v39 = vpop.f32.mrb[80].mxu1 }
 0x20a   : > { %2460 = vst.msk [vmem:[%s4054_s22 + $0x9c] sm:$0xf] %vm2420_vm3, %v3062_v36  ;;  %2524 = vst.msk [vmem:[%s4054_s22 + $0x19c] sm:$0xf] %vm2420_vm3, %v3126_v37  ;;  %v1430_v61 = vadd.f32 %v4312_v40, %v1429_v38  ;;  %v1686_v41 = vadd.f32 %v4312_v40, %v1685_v39  ;;  %v1431_v42 = vpop.f32.mrb[81].mxu0  ;;  %v1687_v43 = vpop.f32.mrb[81].mxu1 }
 0x20b   : > { %v1432_v44 = vpop.f32.mrb[82].mxu0  ;;  %v1688_v45 = vpop.f32.mrb[82].mxu1 }
 0x20c   : > { %v1820_v46 = vmax.f32 %v1430_v61, 0.0  ;;  %v1884_v47 = vmax.f32 %v1686_v41, 0.0  ;;  %v1433_v48 = vadd.f32 %v4312_v40, %v1432_v44  ;;  %v1689_v49 = vadd.f32 %v4312_v40, %v1688_v45  ;;  %v1434_v50 = vpop.f32.mrb[83].mxu0  ;;  %v1690_v51 = vpop.f32.mrb[83].mxu1 }
 0x20e   : > { %v3063_v52 = vpack.c.bf16 %v1820_v46, %v1820_v46  ;;  %v3127_v53 = vpack.c.bf16 %v1884_v47, %v1884_v47  ;;  %v1821_v54 = vmax.f32 %v1433_v48, 0.0  ;;  %v1885_v55 = vmax.f32 %v1689_v49, 0.0 }
 0x210   : > { %2461 = vst.msk [vmem:[%s4054_s22 + $0xa0] sm:$0xf] %vm2420_vm3, %v3063_v52  ;;  %2525 = vst.msk [vmem:[%s4054_s22 + $0x1a0] sm:$0xf] %vm2420_vm3, %v3127_v53  ;;  %v3064_v56 = vpack.c.bf16 %v1821_v54, %v1821_v54  ;;  %v3128_v57 = vpack.c.bf16 %v1885_v55, %v1885_v55 }
 0x211   : > { %v1437_v58 = vpop.f32.mrb[84].mxu0  ;;  %v1693_v59 = vpop.f32.mrb[84].mxu1 }
 0x212   : > { %2462 = vst.msk [vmem:[%s4054_s22 + $0xa4] sm:$0xf] %vm2420_vm3, %v3064_v56  ;;  %2526 = vst.msk [vmem:[%s4054_s22 + $0x1a4] sm:$0xf] %vm2420_vm3, %v3128_v57  ;;  %v1438_v60 = vadd.f32 %v4312_v40, %v1437_v58  ;;  %v1694_v62 = vadd.f32 %v4312_v40, %v1693_v59  ;;  %v1439_v63 = vpop.f32.mrb[85].mxu0  ;;  %v1695_v0 = vpop.f32.mrb[85].mxu1 }
 0x213   : > { %v1440_v1 = vpop.f32.mrb[86].mxu0  ;;  %v1696_v2 = vpop.f32.mrb[86].mxu1 }
 0x214   : > { %v1822_v3 = vmax.f32 %v1438_v60, 0.0  ;;  %v1886_v4 = vmax.f32 %v1694_v62, 0.0  ;;  %v1441_v5 = vadd.f32 %v4312_v40, %v1440_v1  ;;  %v1697_v6 = vadd.f32 %v4312_v40, %v1696_v2  ;;  %v1442_v7 = vpop.f32.mrb[87].mxu0  ;;  %v1698_v8 = vpop.f32.mrb[87].mxu1 }
 0x216   : > { %v3065_v9 = vpack.c.bf16 %v1822_v3, %v1822_v3  ;;  %v3129_v10 = vpack.c.bf16 %v1886_v4, %v1886_v4  ;;  %v1823_v11 = vmax.f32 %v1441_v5, 0.0  ;;  %v1887_v12 = vmax.f32 %v1697_v6, 0.0 }
 0x218   : > { %2463 = vst.msk [vmem:[%s4054_s22 + $0xa8] sm:$0xf] %vm2420_vm3, %v3065_v9  ;;  %2527 = vst.msk [vmem:[%s4054_s22 + $0x1a8] sm:$0xf] %vm2420_vm3, %v3129_v10  ;;  %v3066_v13 = vpack.c.bf16 %v1823_v11, %v1823_v11  ;;  %v3130_v14 = vpack.c.bf16 %v1887_v12, %v1887_v12 }
 0x219   : > { %v1445_v15 = vpop.f32.mrb[88].mxu0  ;;  %v1701_v16 = vpop.f32.mrb[88].mxu1 }
 0x21a   : > { %2464 = vst.msk [vmem:[%s4054_s22 + $0xac] sm:$0xf] %vm2420_vm3, %v3066_v13  ;;  %2528 = vst.msk [vmem:[%s4054_s22 + $0x1ac] sm:$0xf] %vm2420_vm3, %v3130_v14  ;;  %v1446_v17 = vadd.f32 %v4312_v40, %v1445_v15  ;;  %v1702_v18 = vadd.f32 %v4312_v40, %v1701_v16  ;;  %v1447_v19 = vpop.f32.mrb[89].mxu0  ;;  %v1703_v20 = vpop.f32.mrb[89].mxu1 }
 0x21b   : > { %v1448_v21 = vpop.f32.mrb[90].mxu0  ;;  %v1704_v22 = vpop.f32.mrb[90].mxu1 }
 0x21c   : > { %v1824_v23 = vmax.f32 %v1446_v17, 0.0  ;;  %v1888_v24 = vmax.f32 %v1702_v18, 0.0  ;;  %v1449_v25 = vadd.f32 %v4312_v40, %v1448_v21  ;;  %v1705_v26 = vadd.f32 %v4312_v40, %v1704_v22  ;;  %v1450_v27 = vpop.f32.mrb[91].mxu0  ;;  %v1706_v28 = vpop.f32.mrb[91].mxu1 }
 0x21e   : > { %v3067_v29 = vpack.c.bf16 %v1824_v23, %v1824_v23  ;;  %v3131_v30 = vpack.c.bf16 %v1888_v24, %v1888_v24  ;;  %v1825_v31 = vmax.f32 %v1449_v25, 0.0  ;;  %v1889_v32 = vmax.f32 %v1705_v26, 0.0 }
 0x220   : > { %2465 = vst.msk [vmem:[%s4054_s22 + $0xb0] sm:$0xf] %vm2420_vm3, %v3067_v29  ;;  %2529 = vst.msk [vmem:[%s4054_s22 + $0x1b0] sm:$0xf] %vm2420_vm3, %v3131_v30  ;;  %v3068_v33 = vpack.c.bf16 %v1825_v31, %v1825_v31  ;;  %v3132_v34 = vpack.c.bf16 %v1889_v32, %v1889_v32 }
 0x221   : > { %v1453_v35 = vpop.f32.mrb[92].mxu0  ;;  %v1709_v36 = vpop.f32.mrb[92].mxu1 }
 0x222   : > { %2466 = vst.msk [vmem:[%s4054_s22 + $0xb4] sm:$0xf] %vm2420_vm3, %v3068_v33  ;;  %2530 = vst.msk [vmem:[%s4054_s22 + $0x1b4] sm:$0xf] %vm2420_vm3, %v3132_v34  ;;  %v1454_v37 = vadd.f32 %v4312_v40, %v1453_v35  ;;  %v1710_v38 = vadd.f32 %v4312_v40, %v1709_v36  ;;  %v1455_v39 = vpop.f32.mrb[93].mxu0  ;;  %v1711_v61 = vpop.f32.mrb[93].mxu1 }
 0x223   : > { %v1456_v41 = vpop.f32.mrb[94].mxu0  ;;  %v1712_v42 = vpop.f32.mrb[94].mxu1 }
 0x224   : > { %v1826_v43 = vmax.f32 %v1454_v37, 0.0  ;;  %v1890_v44 = vmax.f32 %v1710_v38, 0.0  ;;  %v1457_v45 = vadd.f32 %v4312_v40, %v1456_v41  ;;  %v1713_v46 = vadd.f32 %v4312_v40, %v1712_v42  ;;  %v1458_v47 = vpop.f32.mrb[95].mxu0  ;;  %v1714_v48 = vpop.f32.mrb[95].mxu1 }
 0x226   : > { %v3069_v49 = vpack.c.bf16 %v1826_v43, %v1826_v43  ;;  %v3133_v50 = vpack.c.bf16 %v1890_v44, %v1890_v44  ;;  %v1827_v51 = vmax.f32 %v1457_v45, 0.0  ;;  %v1891_v52 = vmax.f32 %v1713_v46, 0.0 }
 0x228   : > { %2467 = vst.msk [vmem:[%s4054_s22 + $0xb8] sm:$0xf] %vm2420_vm3, %v3069_v49  ;;  %2531 = vst.msk [vmem:[%s4054_s22 + $0x1b8] sm:$0xf] %vm2420_vm3, %v3133_v50  ;;  %v3070_v53 = vpack.c.bf16 %v1827_v51, %v1827_v51  ;;  %v3134_v54 = vpack.c.bf16 %v1891_v52, %v1891_v52 }
 0x229   : > { %v1461_v55 = vpop.f32.mrb[96].mxu0  ;;  %v1717_v56 = vpop.f32.mrb[96].mxu1 }
 0x22a   : > { %2468 = vst.msk [vmem:[%s4054_s22 + $0xbc] sm:$0xf] %vm2420_vm3, %v3070_v53  ;;  %2532 = vst.msk [vmem:[%s4054_s22 + $0x1bc] sm:$0xf] %vm2420_vm3, %v3134_v54  ;;  %v1462_v57 = vadd.f32 %v4312_v40, %v1461_v55  ;;  %v1718_v58 = vadd.f32 %v4312_v40, %v1717_v56  ;;  %v1463_v59 = vpop.f32.mrb[97].mxu0  ;;  %v1719_v60 = vpop.f32.mrb[97].mxu1 }
 0x22b   : > { %v1464_v62 = vpop.f32.mrb[98].mxu0  ;;  %v1720_v63 = vpop.f32.mrb[98].mxu1 }
 0x22c   : > { %v1828_v0 = vmax.f32 %v1462_v57, 0.0  ;;  %v1892_v1 = vmax.f32 %v1718_v58, 0.0  ;;  %v1465_v2 = vadd.f32 %v4312_v40, %v1464_v62  ;;  %v1721_v3 = vadd.f32 %v4312_v40, %v1720_v63  ;;  %v1466_v4 = vpop.f32.mrb[99].mxu0  ;;  %v1722_v5 = vpop.f32.mrb[99].mxu1 }
 0x22e   : > { %v3071_v6 = vpack.c.bf16 %v1828_v0, %v1828_v0  ;;  %v3135_v7 = vpack.c.bf16 %v1892_v1, %v1892_v1  ;;  %v1829_v8 = vmax.f32 %v1465_v2, 0.0  ;;  %v1893_v9 = vmax.f32 %v1721_v3, 0.0 }
 0x230   : > { %2469 = vst.msk [vmem:[%s4054_s22 + $0xc0] sm:$0xf] %vm2420_vm3, %v3071_v6  ;;  %2533 = vst.msk [vmem:[%s4054_s22 + $0x1c0] sm:$0xf] %vm2420_vm3, %v3135_v7  ;;  %v3072_v10 = vpack.c.bf16 %v1829_v8, %v1829_v8  ;;  %v3136_v11 = vpack.c.bf16 %v1893_v9, %v1893_v9 }
 0x231   : > { %v1469_v12 = vpop.f32.mrb[100].mxu0  ;;  %v1725_v13 = vpop.f32.mrb[100].mxu1 }
 0x232   : > { %2470 = vst.msk [vmem:[%s4054_s22 + $0xc4] sm:$0xf] %vm2420_vm3, %v3072_v10  ;;  %2534 = vst.msk [vmem:[%s4054_s22 + $0x1c4] sm:$0xf] %vm2420_vm3, %v3136_v11  ;;  %v1470_v14 = vadd.f32 %v4312_v40, %v1469_v12  ;;  %v1726_v15 = vadd.f32 %v4312_v40, %v1725_v13  ;;  %v1471_v16 = vpop.f32.mrb[101].mxu0  ;;  %v1727_v17 = vpop.f32.mrb[101].mxu1 }
 0x233   : > { %v1472_v18 = vpop.f32.mrb[102].mxu0  ;;  %v1728_v19 = vpop.f32.mrb[102].mxu1 }
 0x234   : > { %v1830_v20 = vmax.f32 %v1470_v14, 0.0  ;;  %v1894_v21 = vmax.f32 %v1726_v15, 0.0  ;;  %v1473_v22 = vadd.f32 %v4312_v40, %v1472_v18  ;;  %v1729_v23 = vadd.f32 %v4312_v40, %v1728_v19  ;;  %v1474_v24 = vpop.f32.mrb[103].mxu0  ;;  %v1730_v25 = vpop.f32.mrb[103].mxu1 }
 0x236   : > { %v3073_v26 = vpack.c.bf16 %v1830_v20, %v1830_v20  ;;  %v3137_v27 = vpack.c.bf16 %v1894_v21, %v1894_v21  ;;  %v1831_v28 = vmax.f32 %v1473_v22, 0.0  ;;  %v1895_v29 = vmax.f32 %v1729_v23, 0.0 }
 0x238   : > { %2471 = vst.msk [vmem:[%s4054_s22 + $0xc8] sm:$0xf] %vm2420_vm3, %v3073_v26  ;;  %2535 = vst.msk [vmem:[%s4054_s22 + $0x1c8] sm:$0xf] %vm2420_vm3, %v3137_v27  ;;  %v3074_v30 = vpack.c.bf16 %v1831_v28, %v1831_v28  ;;  %v3138_v31 = vpack.c.bf16 %v1895_v29, %v1895_v29 }
 0x239   : > { %v1477_v32 = vpop.f32.mrb[104].mxu0  ;;  %v1733_v33 = vpop.f32.mrb[104].mxu1 }
 0x23a   : > { %2472 = vst.msk [vmem:[%s4054_s22 + $0xcc] sm:$0xf] %vm2420_vm3, %v3074_v30  ;;  %2536 = vst.msk [vmem:[%s4054_s22 + $0x1cc] sm:$0xf] %vm2420_vm3, %v3138_v31  ;;  %v1478_v34 = vadd.f32 %v4312_v40, %v1477_v32  ;;  %v1734_v35 = vadd.f32 %v4312_v40, %v1733_v33  ;;  %v1479_v36 = vpop.f32.mrb[105].mxu0  ;;  %v1735_v37 = vpop.f32.mrb[105].mxu1 }
 0x23b   : > { %v1480_v38 = vpop.f32.mrb[106].mxu0  ;;  %v1736_v39 = vpop.f32.mrb[106].mxu1 }
 0x23c   : > { %v1832_v61 = vmax.f32 %v1478_v34, 0.0  ;;  %v1896_v41 = vmax.f32 %v1734_v35, 0.0  ;;  %v1481_v42 = vadd.f32 %v4312_v40, %v1480_v38  ;;  %v1737_v43 = vadd.f32 %v4312_v40, %v1736_v39  ;;  %v1482_v44 = vpop.f32.mrb[107].mxu0  ;;  %v1738_v45 = vpop.f32.mrb[107].mxu1 }
 0x23e   : > { %v3075_v46 = vpack.c.bf16 %v1832_v61, %v1832_v61  ;;  %v3139_v47 = vpack.c.bf16 %v1896_v41, %v1896_v41  ;;  %v1833_v48 = vmax.f32 %v1481_v42, 0.0  ;;  %v1897_v49 = vmax.f32 %v1737_v43, 0.0 }
 0x240   : > { %2473 = vst.msk [vmem:[%s4054_s22 + $0xd0] sm:$0xf] %vm2420_vm3, %v3075_v46  ;;  %2537 = vst.msk [vmem:[%s4054_s22 + $0x1d0] sm:$0xf] %vm2420_vm3, %v3139_v47  ;;  %v3076_v50 = vpack.c.bf16 %v1833_v48, %v1833_v48  ;;  %v3140_v51 = vpack.c.bf16 %v1897_v49, %v1897_v49 }
 0x241   : > { %v1485_v52 = vpop.f32.mrb[108].mxu0  ;;  %v1741_v53 = vpop.f32.mrb[108].mxu1 }
 0x242   : > { %2474 = vst.msk [vmem:[%s4054_s22 + $0xd4] sm:$0xf] %vm2420_vm3, %v3076_v50  ;;  %2538 = vst.msk [vmem:[%s4054_s22 + $0x1d4] sm:$0xf] %vm2420_vm3, %v3140_v51  ;;  %v1486_v54 = vadd.f32 %v4312_v40, %v1485_v52  ;;  %v1742_v55 = vadd.f32 %v4312_v40, %v1741_v53  ;;  %v1487_v56 = vpop.f32.mrb[109].mxu0  ;;  %v1743_v57 = vpop.f32.mrb[109].mxu1 }
 0x243   : > { %v1488_v58 = vpop.f32.mrb[110].mxu0  ;;  %v1744_v59 = vpop.f32.mrb[110].mxu1 }
 0x244   : > { %v1834_v60 = vmax.f32 %v1486_v54, 0.0  ;;  %v1898_v62 = vmax.f32 %v1742_v55, 0.0  ;;  %v1489_v63 = vadd.f32 %v4312_v40, %v1488_v58  ;;  %v1745_v0 = vadd.f32 %v4312_v40, %v1744_v59  ;;  %v1490_v1 = vpop.f32.mrb[111].mxu0  ;;  %v1746_v2 = vpop.f32.mrb[111].mxu1 }
 0x246   : > { %v3077_v3 = vpack.c.bf16 %v1834_v60, %v1834_v60  ;;  %v3141_v4 = vpack.c.bf16 %v1898_v62, %v1898_v62  ;;  %v1835_v5 = vmax.f32 %v1489_v63, 0.0  ;;  %v1899_v6 = vmax.f32 %v1745_v0, 0.0 }
 0x248   : > { %2475 = vst.msk [vmem:[%s4054_s22 + $0xd8] sm:$0xf] %vm2420_vm3, %v3077_v3  ;;  %2539 = vst.msk [vmem:[%s4054_s22 + $0x1d8] sm:$0xf] %vm2420_vm3, %v3141_v4  ;;  %v3078_v7 = vpack.c.bf16 %v1835_v5, %v1835_v5  ;;  %v3142_v8 = vpack.c.bf16 %v1899_v6, %v1899_v6 }
 0x249   : > { %v1493_v9 = vpop.f32.mrb[112].mxu0  ;;  %v1749_v10 = vpop.f32.mrb[112].mxu1 }
 0x24a   : > { %2476 = vst.msk [vmem:[%s4054_s22 + $0xdc] sm:$0xf] %vm2420_vm3, %v3078_v7  ;;  %2540 = vst.msk [vmem:[%s4054_s22 + $0x1dc] sm:$0xf] %vm2420_vm3, %v3142_v8  ;;  %v1494_v11 = vadd.f32 %v4312_v40, %v1493_v9  ;;  %v1750_v12 = vadd.f32 %v4312_v40, %v1749_v10  ;;  %v1495_v13 = vpop.f32.mrb[113].mxu0  ;;  %v1751_v14 = vpop.f32.mrb[113].mxu1 }
 0x24b   : > { %v1496_v15 = vpop.f32.mrb[114].mxu0  ;;  %v1752_v16 = vpop.f32.mrb[114].mxu1 }
 0x24c   : > { %v1836_v17 = vmax.f32 %v1494_v11, 0.0  ;;  %v1900_v18 = vmax.f32 %v1750_v12, 0.0  ;;  %v1497_v19 = vadd.f32 %v4312_v40, %v1496_v15  ;;  %v1753_v20 = vadd.f32 %v4312_v40, %v1752_v16  ;;  %v1498_v21 = vpop.f32.mrb[115].mxu0  ;;  %v1754_v22 = vpop.f32.mrb[115].mxu1 }
 0x24e   : > { %v3079_v23 = vpack.c.bf16 %v1836_v17, %v1836_v17  ;;  %v3143_v24 = vpack.c.bf16 %v1900_v18, %v1900_v18  ;;  %v1837_v25 = vmax.f32 %v1497_v19, 0.0  ;;  %v1901_v26 = vmax.f32 %v1753_v20, 0.0 }
 0x250   : > { %2477 = vst.msk [vmem:[%s4054_s22 + $0xe0] sm:$0xf] %vm2420_vm3, %v3079_v23  ;;  %2541 = vst.msk [vmem:[%s4054_s22 + $0x1e0] sm:$0xf] %vm2420_vm3, %v3143_v24  ;;  %v3080_v27 = vpack.c.bf16 %v1837_v25, %v1837_v25  ;;  %v3144_v28 = vpack.c.bf16 %v1901_v26, %v1901_v26 }
 0x251   : > { %v1501_v29 = vpop.f32.mrb[116].mxu0  ;;  %v1757_v30 = vpop.f32.mrb[116].mxu1 }
 0x252   : > { %2478 = vst.msk [vmem:[%s4054_s22 + $0xe4] sm:$0xf] %vm2420_vm3, %v3080_v27  ;;  %2542 = vst.msk [vmem:[%s4054_s22 + $0x1e4] sm:$0xf] %vm2420_vm3, %v3144_v28  ;;  %v1502_v31 = vadd.f32 %v4312_v40, %v1501_v29  ;;  %v1758_v32 = vadd.f32 %v4312_v40, %v1757_v30  ;;  %v1503_v33 = vpop.f32.mrb[117].mxu0  ;;  %v1759_v34 = vpop.f32.mrb[117].mxu1 }
 0x253   : > { %v1504_v35 = vpop.f32.mrb[118].mxu0  ;;  %v1760_v36 = vpop.f32.mrb[118].mxu1 }
 0x254   : > { %v1838_v37 = vmax.f32 %v1502_v31, 0.0  ;;  %v1902_v38 = vmax.f32 %v1758_v32, 0.0  ;;  %v1505_v39 = vadd.f32 %v4312_v40, %v1504_v35  ;;  %v1761_v61 = vadd.f32 %v4312_v40, %v1760_v36  ;;  %v1506_v41 = vpop.f32.mrb[119].mxu0  ;;  %v1762_v42 = vpop.f32.mrb[119].mxu1 }
 0x256   : > { %v3081_v43 = vpack.c.bf16 %v1838_v37, %v1838_v37  ;;  %v3145_v44 = vpack.c.bf16 %v1902_v38, %v1902_v38  ;;  %v1839_v45 = vmax.f32 %v1505_v39, 0.0  ;;  %v1903_v46 = vmax.f32 %v1761_v61, 0.0 }
 0x258   : > { %2479 = vst.msk [vmem:[%s4054_s22 + $0xe8] sm:$0xf] %vm2420_vm3, %v3081_v43  ;;  %2543 = vst.msk [vmem:[%s4054_s22 + $0x1e8] sm:$0xf] %vm2420_vm3, %v3145_v44  ;;  %v3082_v47 = vpack.c.bf16 %v1839_v45, %v1839_v45  ;;  %v3146_v48 = vpack.c.bf16 %v1903_v46, %v1903_v46 }
 0x259   : > { %v1509_v49 = vpop.f32.mrb[120].mxu0  ;;  %v1765_v50 = vpop.f32.mrb[120].mxu1 }
 0x25a   : > { %2480 = vst.msk [vmem:[%s4054_s22 + $0xec] sm:$0xf] %vm2420_vm3, %v3082_v47  ;;  %2544 = vst.msk [vmem:[%s4054_s22 + $0x1ec] sm:$0xf] %vm2420_vm3, %v3146_v48  ;;  %v1510_v51 = vadd.f32 %v4312_v40, %v1509_v49  ;;  %v1766_v52 = vadd.f32 %v4312_v40, %v1765_v50  ;;  %v1511_v53 = vpop.f32.mrb[121].mxu0  ;;  %v1767_v54 = vpop.f32.mrb[121].mxu1 }
 0x25b   : > { %v1512_v55 = vpop.f32.mrb[122].mxu0  ;;  %v1768_v56 = vpop.f32.mrb[122].mxu1 }
 0x25c   : > { %v1840_v57 = vmax.f32 %v1510_v51, 0.0  ;;  %v1904_v58 = vmax.f32 %v1766_v52, 0.0  ;;  %v1513_v59 = vadd.f32 %v4312_v40, %v1512_v55  ;;  %v1769_v60 = vadd.f32 %v4312_v40, %v1768_v56  ;;  %v1514_v62 = vpop.f32.mrb[123].mxu0  ;;  %v1770_v63 = vpop.f32.mrb[123].mxu1 }
 0x25e   : > { %v3083_v0 = vpack.c.bf16 %v1840_v57, %v1840_v57  ;;  %v3147_v1 = vpack.c.bf16 %v1904_v58, %v1904_v58  ;;  %v1841_v2 = vmax.f32 %v1513_v59, 0.0  ;;  %v1905_v3 = vmax.f32 %v1769_v60, 0.0 }
 0x260   : > { %2481 = vst.msk [vmem:[%s4054_s22 + $0xf0] sm:$0xf] %vm2420_vm3, %v3083_v0  ;;  %2545 = vst.msk [vmem:[%s4054_s22 + $0x1f0] sm:$0xf] %vm2420_vm3, %v3147_v1  ;;  %v3084_v4 = vpack.c.bf16 %v1841_v2, %v1841_v2  ;;  %v3148_v5 = vpack.c.bf16 %v1905_v3, %v1905_v3 }
 0x261   : > { %v1517_v6 = vpop.f32.mrb[124].mxu0  ;;  %v1773_v7 = vpop.f32.mrb[124].mxu1 }
 0x262   : > { %2482 = vst.msk [vmem:[%s4054_s22 + $0xf4] sm:$0xf] %vm2420_vm3, %v3084_v4  ;;  %2546 = vst.msk [vmem:[%s4054_s22 + $0x1f4] sm:$0xf] %vm2420_vm3, %v3148_v5  ;;  %v1518_v8 = vadd.f32 %v4312_v40, %v1517_v6  ;;  %v1774_v9 = vadd.f32 %v4312_v40, %v1773_v7  ;;  %v1519_v10 = vpop.f32.mrb[125].mxu0  ;;  %v1775_v11 = vpop.f32.mrb[125].mxu1 }
 0x263   : > { %v1520_v12 = vpop.f32.mrb[126].mxu0  ;;  %v1776_v13 = vpop.f32.mrb[126].mxu1 }
 0x264   : > { %v1842_v14 = vmax.f32 %v1518_v8, 0.0  ;;  %v1906_v15 = vmax.f32 %v1774_v9, 0.0  ;;  %v1521_v16 = vadd.f32 %v4312_v40, %v1520_v12  ;;  %v1777_v17 = vadd.f32 %v4312_v40, %v1776_v13  ;;  %v1522_v18 = vpop.f32.mrb[127].mxu0  ;;  %v1778_v19 = vpop.f32.mrb[127].mxu1 }
 0x266   : > { %v3085_v20 = vpack.c.bf16 %v1842_v14, %v1842_v14  ;;  %v3149_v21 = vpack.c.bf16 %v1906_v15, %v1906_v15  ;;  %v1843_v22 = vmax.f32 %v1521_v16, 0.0  ;;  %v1907_v23 = vmax.f32 %v1777_v17, 0.0 }
 0x268   : > { %2483 = vst.msk [vmem:[%s4054_s22 + $0xf8] sm:$0xf] %vm2420_vm3, %v3085_v20  ;;  %2547 = vst.msk [vmem:[%s4054_s22 + $0x1f8] sm:$0xf] %vm2420_vm3, %v3149_v21  ;;  %v3086_v40 = vpack.c.bf16 %v1843_v22, %v1843_v22  ;;  %v3150_v24 = vpack.c.bf16 %v1907_v23, %v1907_v23 }
 0x26a   : > { %2484 = vst.msk [vmem:[%s4054_s22 + $0xfc] sm:$0xf] %vm2420_vm3, %v3086_v40  ;;  %2548 = vst.msk [vmem:[%s4054_s22 + $0x1fc] sm:$0xf] %vm2420_vm3, %v3150_v24 }
 0x26b   : > { %3565 = shalt.err (!%p3562_p11)
}
 0x26c   : > { %s3566_s10 = scalar_lea.hbm %s4455_s9, 8192  ;;  %s3570_s29 = scalar_lea.hbm %s4517_s3, 16384 }
 0x26d   : > { %p3567_p0 = scmp.ne.s32.totalorder %s4455_s9, %s3566_s10  ;;  %p3571_p6 = scmp.lt.u32.totalorder %s4455_s9, %s4517_s3 }
 0x26e   : > { %p3572_p7 = scmp.lt.u32.totalorder %s3570_s29, %s3566_s10  ;;  %p3574_p8 = scmp.lt.u32.totalorder %s3566_s10, %s4455_s9 }
 0x26f   : > { %p3568_p4 = pnand %p3567_p0, %p4532_p12 }
 0x270   : > { %p3573_p2 = por %p3572_p7, %p3571_p6 }
 0x271   : > { %p3569_p13 = pneg %p3568_p4 }
 0x272   : > { %p3575_p1 = por %p3574_p8, %p3573_p2 }
 0x274   : > { %p3576_p10 = pnand %p3575_p1, %p3569_p13 }
 0x276   : > { %3579 = shalt.err (!%p3576_p10)
}
 0x277   : > { %s3650_s22 = smov 64   ;;  %s3651_s24 = smov 4  }
 0x278   : > { %3182 = dma.vmem_to_hbm [thread:$0]  (%p4532_p12), %s4457_s7, 8192, %s4455_s9, %s2550_s15, %s3650_s22, %s3650_s22, %s3651_s24  }
 0x279 PF: > { %s2579_s8 = sand.u32 1, %s3618_s12   ;;  %p4533_p3 = scmp.ne.s32.totalorder %s4525_s23, 0 }
 0x27a   : > { %p4534_p5 = scmp.ge.s32.totalorder %s3638_s17, 2  ;;  %s2580_s26 = scalar_lea.sflag [#allocation4], %s2579_s8 }
 0x27c   : > { %p3196_p9 = pnand %p4534_p5, %p4533_p3 }
 0x27e   : > { %3613 = dma.done.wait (!%p3196_p9), %s2580_s26, 8192  }
 0x27f   : > { %3615 = vsyncadd (!%p3196_p9), %s2580_s26, 4294959104  ;;  %s20_s17 = sadd.s32 1, %s3638_s17   ;;  %s4535_s12 = smov %s3622_s13 }
 0x280   : > { %p17_p11 = scmp.ge.s32.totalorder %s20_s17, 4   ;;  %s4536_s13 = smov %s3626_s14 }
 0x281   : > { %s4537_s14 = smov %s3815_s4  ;;  %s4538_s15 = smov %s3634_s16 }
 0x282   : > { %s4539_s16 = smov %s4541_s18  ;;  %19 = sbr.rel (!%p17_p11) target bundleno = 7 (0x7), region = 87 }
 0x289   :  { %2585 = vsyncpa [#allocation3], 1 }
 0x28a   :  { %2587 = vsyncpa [#allocation3 + $0x1], 1 }
 0x28b   :  { %2588 = vsyncpa [#allocation6], 1 }
 0x28c   :  { %2589 = vsyncpa [#allocation4], 1 }
 0x28d   :  { %2591 = vsyncpa [#allocation4 + $0x1], 1 }

</bundles_post_ra>
